<compile_context>
chip_gen: v6e
topology: v6e:2x2x1
jax: 0.10.0
libtpu: 0.0.40
codegen_flags: <defaults>
</compile_context>

<pallas_src>
import functools
import math

import jax
import jax.numpy as jnp
from jax.experimental import pallas as pl
from jax.experimental.pallas import tpu as pltpu


# ------------------------------------------------------------------ kernel --

def _encoder_stack_kernel(valid_ref,              # SMEM (B,) int32 (scalar prefetch)
                          x_ref,                  # (B*S, H) embeddings*sqrt(H)+posenc
                          wqkv_ref,               # (1, H, 3H)  [Wq/sqrt(d) | Wk | Wv]
                          wo_ref,                 # (1, H, H)
                          g1_ref, b1_ref,         # (1, 1, H)
                          w1_ref, bias1_ref,      # (1, H, F), (1, 1, F)
                          w2_ref, bias2_ref,      # (1, F, H), (1, 1, H)
                          g2_ref, b2_ref,         # (1, 1, H)
                          o_ref,                  # (B*S, H)  resident across layers
                          *, batch, seq, num_heads):
    layer = pl.program_id(0)
    B, S, nh = batch, seq, num_heads
    BS, H = o_ref.shape
    d = H // nh

    # Layer 0: seed the resident activation with the (already position-encoded)
    # input.  The output block index is constant across the layer axis, so this
    # buffer stays in VMEM for the whole stack and is written to HBM once.
    @pl.when(layer == 0)
    def _():
        o_ref[...] = x_ref[...]

    x = o_ref[...]                                            # (BS, H) f32

    # ---- fused QKV projection: one lane-dense (BS,H) x (H,3H) matmul ---------
    qkv = jnp.dot(x, wqkv_ref[0], preferred_element_type=jnp.float32)   # (BS, 3H)

    # ---- head split with batch folded into the einsum batch dim (b-major) ----
    # TODO(synk): a single reshape+transpose relayout would be cheaper at scale,
    # but Mosaic transpose support for permutations mixing major and sublane
    # dims is restricted; build (B*nh, S, d) from sublane-aligned row slices +
    # per-head lane slices (all static, known to lower).
    row_blocks = [qkv[b * S:(b + 1) * S] for b in range(B)]   # B x (S, 3H)

    def split(off):
        return jnp.stack([rb[:, off + h * d: off + (h + 1) * d]
                          for rb in row_blocks for h in range(nh)], axis=0)

    q, k, v = split(0), split(H), split(2 * H)                # (B*nh, S, d)

    # ---- attention: one contraction batched over B*nh heads ------------------
    # (1/sqrt(d) already folded into the Wq columns of wqkv.)
    scores = jnp.einsum("gqd,gkd->gqk", q, k,
                        preferred_element_type=jnp.float32)   # (B*nh, S, S)

    # masked_softmax: key positions >= valid_lens[b] get -1e6 before softmax.
    col = jax.lax.broadcasted_iota(jnp.int32, (nh, S, S), 2)
    parts = []
    for b in range(B):
        sb = scores[b * nh:(b + 1) * nh]                      # leading-dim slice
        parts.append(jnp.where(col < valid_ref[b], sb, jnp.float32(-1e6)))
    scores = jnp.concatenate(parts, axis=0)

    m = jnp.max(scores, axis=-1, keepdims=True)
    e = jnp.exp(scores - m)
    l = jnp.sum(e, axis=-1, keepdims=True)
    # TODO(synk): pl.reciprocal(l, approx=True) would move this to the EUP slot,
    # but its precision is looser than the 1e-4 check vs the f32 reference.
    p = e * pl.reciprocal(l, approx=False)

    attn = jnp.einsum("gqk,gkd->gqd", p, v,
                      preferred_element_type=jnp.float32)     # (B*nh, S, d)

    # ---- head merge back to (BS, H) -------------------------------------------
    out_rows = [jnp.concatenate([attn[b * nh + h] for h in range(nh)], axis=-1)
                for b in range(B)]                            # B x (S, H)
    attn2d = jnp.concatenate(out_rows, axis=0)                # (BS, H)

    # ---- Wo projection + residual + LayerNorm 1 --------------------------------
    z = x + jnp.dot(attn2d, wo_ref[0], preferred_element_type=jnp.float32)
    mean = jnp.mean(z, axis=-1, keepdims=True)
    var = jnp.mean(jnp.square(z - mean), axis=-1, keepdims=True)
    y = (z - mean) * jax.lax.rsqrt(var + 1e-5) * g1_ref[0] + b1_ref[0]

    # ---- position-wise FFN + residual + LayerNorm 2 -----------------------------
    h1 = jnp.maximum(
        jnp.dot(y, w1_ref[0], preferred_element_type=jnp.float32) + bias1_ref[0],
        0.0)
    f = jnp.dot(h1, w2_ref[0], preferred_element_type=jnp.float32) + bias2_ref[0]
    z2 = y + f
    mean2 = jnp.mean(z2, axis=-1, keepdims=True)
    var2 = jnp.mean(jnp.square(z2 - mean2), axis=-1, keepdims=True)
    o_ref[...] = (z2 - mean2) * jax.lax.rsqrt(var2 + 1e-5) * g2_ref[0] + b2_ref[0]


# ----------------------------------------------------------------- wrapper --

def transformer_encoder(tokens, valid_lens, emb_table, P, block_params, num_heads):
    """Mirror of TransformerEncoder.forward (dropout rate = 0)."""
    B, S = tokens.shape
    H = emb_table.shape[1]
    L = len(block_params)
    F = block_params[0]["w1"].shape[1]
    d = H // num_heads

    # TODO(synk): the embedding gather is a data-dependent lookup kept in plain
    # JAX; XLA fuses the sqrt(H) scale and positional-encoding add with it, so
    # the standalone posenc kernel is no longer needed.
    X0 = (jnp.take(emb_table, tokens, axis=0) * math.sqrt(H)
          + P[:S][None]).astype(jnp.float32).reshape(B * S, H)

    # One-time parameter stacking: fused [Wq/sqrt(d) | Wk | Wv] per layer and a
    # leading layer axis so weights pipeline across the layer grid dimension.
    stack = lambda key: jnp.stack([p[key] for p in block_params])
    wqkv = jnp.stack([jnp.concatenate(
        [p["wq"] / math.sqrt(d), p["wk"], p["wv"]], axis=1) for p in block_params])

    layer_w = lambda l, vl: (l, 0, 0)     # per-layer weights (pipelined)
    resident = lambda l, vl: (0, 0)       # activation block, constant across layers

    grid_spec = pltpu.PrefetchScalarGridSpec(
        num_scalar_prefetch=1,            # valid_lens -> SMEM
        grid=(L,),
        in_specs=[
            pl.BlockSpec((B * S, H), resident),        # X0 (read once, stays resident)
            pl.BlockSpec((1, H, 3 * H), layer_w),      # wqkv
            pl.BlockSpec((1, H, H), layer_w),          # wo
            pl.BlockSpec((1, 1, H), layer_w),          # gamma1
            pl.BlockSpec((1, 1, H), layer_w),          # beta1
            pl.BlockSpec((1, H, F), layer_w),          # ffn W1
            pl.BlockSpec((1, 1, F), layer_w),          # ffn b1
            pl.BlockSpec((1, F, H), layer_w),          # ffn W2
            pl.BlockSpec((1, 1, H), layer_w),          # ffn b2
            pl.BlockSpec((1, 1, H), layer_w),          # gamma2
            pl.BlockSpec((1, 1, H), layer_w),          # beta2
        ],
        out_specs=pl.BlockSpec((B * S, H), resident),
    )

    out = pl.pallas_call(
        functools.partial(_encoder_stack_kernel,
                          batch=B, seq=S, num_heads=num_heads),
        out_shape=jax.ShapeDtypeStruct((B * S, H), jnp.float32),
        grid_spec=grid_spec,
        compiler_params=pltpu.CompilerParams(
            dimension_semantics=("arbitrary",),        # layers are sequential
            vmem_limit_bytes=32 * 1024 * 1024),
    )(valid_lens.astype(jnp.int32), X0,
      wqkv, stack("wo"),
      stack("g1").reshape(L, 1, H), stack("b1").reshape(L, 1, H),
      stack("w1"), stack("bias1").reshape(L, 1, F),
      stack("w2"), stack("bias2").reshape(L, 1, H),
      stack("g2").reshape(L, 1, H), stack("b2").reshape(L, 1, H))
    return out.reshape(B, S, H)


# -------------------------------------------------- pure-JAX reference ------

def _make_positional_encoding(max_len, H):
    pos = jnp.arange(max_len, dtype=jnp.float32)[:, None]
    freqs = jnp.power(10000.0, jnp.arange(0, H, 2, dtype=jnp.float32) / H)
    ang = pos / freqs
    P = jnp.zeros((max_len, H), jnp.float32)
    P = P.at[:, 0::2].set(jnp.sin(ang))
    P = P.at[:, 1::2].set(jnp.cos(ang))
    return P


def _ref_ln(z, g, b):
    mean = jnp.mean(z, axis=-1, keepdims=True)
    var = jnp.mean(jnp.square(z - mean), axis=-1, keepdims=True)
    return (z - mean) * jax.lax.rsqrt(var + 1e-5) * g + b


def _ref_encoder(tokens, valid_lens, emb_table, P, block_params, num_heads):
    B, S = tokens.shape
    H = emb_table.shape[1]
    d = H // num_heads
    X = emb_table[tokens] * math.sqrt(H) + P[:S][None]
    for p in block_params:
        def split(t):
            return t.reshape(B, S, num_heads, d).transpose(0, 2, 1, 3)
        qh, kh, vh = split(X @ p["wq"]), split(X @ p["wk"]), split(X @ p["wv"])
        scores = jnp.einsum("bhqd,bhkd->bhqk", qh, kh) / math.sqrt(d)
        col = jnp.arange(S)[None, None, None, :]
        scores = jnp.where(col < valid_lens[:, None, None, None], scores, -1e6)
        w = jax.nn.softmax(scores, axis=-1)
        attn = jnp.einsum("bhqk,bhkd->bhqd", w, vh)
        attn = attn.transpose(0, 2, 1, 3).reshape(B, S, H)
        Y = _ref_ln(X + attn @ p["wo"], p["g1"], p["b1"])
        Ff = jnp.maximum(Y @ p["w1"] + p["bias1"], 0.0) @ p["w2"] + p["bias2"]
        X = _ref_ln(Y + Ff, p["g2"], p["b2"])
    return X


# -------------------------------------------------------------------- main --

if __name__ == "__main__":
    B, S = 2, 8
    vocab_size, H, F, num_heads, num_blks = 100, 32, 64, 4, 2

    key = jax.random.PRNGKey(0)
    keys = jax.random.split(key, 2 + 12 * num_blks)
    sc = 0.1

    emb_table = jax.random.normal(keys[0], (vocab_size, H), jnp.float32) * sc
    tokens = jax.random.randint(keys[1], (B, S), 0, vocab_size)
    valid_lens = jnp.array([5, 7], dtype=jnp.int32)
    P = _make_positional_encoding(1000, H)

    block_params = []
    idx = 2
    for _ in range(num_blks):
        k = keys[idx:idx + 12]
        idx += 12
        block_params.append({
            "wq": jax.random.normal(k[0], (H, H), jnp.float32) * sc,
            "wk": jax.random.normal(k[1], (H, H), jnp.float32) * sc,
            "wv": jax.random.normal(k[2], (H, H), jnp.float32) * sc,
            "wo": jax.random.normal(k[3], (H, H), jnp.float32) * sc,
            "w1": jax.random.normal(k[4], (H, F), jnp.float32) * sc,
            "bias1": jax.random.normal(k[5], (F,), jnp.float32) * sc,
            "w2": jax.random.normal(k[6], (F, H), jnp.float32) * sc,
            "bias2": jax.random.normal(k[7], (H,), jnp.float32) * sc,
            "g1": 1.0 + jax.random.normal(k[8], (H,), jnp.float32) * sc,
            "b1": jax.random.normal(k[9], (H,), jnp.float32) * sc,
            "g2": 1.0 + jax.random.normal(k[10], (H,), jnp.float32) * sc,
            "b2": jax.random.normal(k[11], (H,), jnp.float32) * sc,
        })

    fwd = jax.jit(lambda t, vl: transformer_encoder(
        t, vl, emb_table, P, block_params, num_heads))
    out = jax.block_until_ready(fwd(tokens, valid_lens))

    ref = _ref_encoder(tokens, valid_lens, emb_table, P, block_params, num_heads)
    assert out.shape == (B, S, H)
    assert jnp.allclose(out, ref, atol=1e-4, rtol=1e-4), "mismatch vs pure-JAX reference"

    print("KERNEL_OK")
</pallas_src>

<mosaic_0001>
module attributes {stable_mosaic.version = 11 : i64} {
  func.func @_encoder_stack_kernel(%arg0: i32, %arg1: memref<2xi32, #tpu.memory_space<smem>>, %arg2: memref<16x32xf32, #tpu.memory_space<vmem>>, %arg3: memref<1x32x96xf32, #tpu.memory_space<vmem>>, %arg4: memref<1x32x32xf32, #tpu.memory_space<vmem>>, %arg5: memref<1x1x32xf32, #tpu.memory_space<vmem>>, %arg6: memref<1x1x32xf32, #tpu.memory_space<vmem>>, %arg7: memref<1x32x64xf32, #tpu.memory_space<vmem>>, %arg8: memref<1x1x64xf32, #tpu.memory_space<vmem>>, %arg9: memref<1x64x32xf32, #tpu.memory_space<vmem>>, %arg10: memref<1x1x32xf32, #tpu.memory_space<vmem>>, %arg11: memref<1x1x32xf32, #tpu.memory_space<vmem>>, %arg12: memref<1x1x32xf32, #tpu.memory_space<vmem>>, %arg13: memref<16x32xf32, #tpu.memory_space<vmem>>) attributes {dimension_semantics = [#tpu.dimension_semantics<arbitrary>], iteration_bounds = array<i64: 2>, scalar_prefetch = 1 : i64, scratch_operands = 0 : i64, tpu.core_type = #tpu.core_type<tc>, window_params = [{pipeline_mode = #tpu.pipeline_mode<synchronous>, transform_indices = @transform_0, window_bounds = array<i64: 16, 32>}, {transform_indices = @transform_1, window_bounds = array<i64: 1, 32, 96>}, {transform_indices = @transform_2, window_bounds = array<i64: 1, 32, 32>}, {transform_indices = @transform_3, window_bounds = array<i64: 1, 1, 32>}, {transform_indices = @transform_4, window_bounds = array<i64: 1, 1, 32>}, {transform_indices = @transform_5, window_bounds = array<i64: 1, 32, 64>}, {transform_indices = @transform_6, window_bounds = array<i64: 1, 1, 64>}, {transform_indices = @transform_7, window_bounds = array<i64: 1, 64, 32>}, {transform_indices = @transform_8, window_bounds = array<i64: 1, 1, 32>}, {transform_indices = @transform_9, window_bounds = array<i64: 1, 1, 32>}, {transform_indices = @transform_10, window_bounds = array<i64: 1, 1, 32>}, {pipeline_mode = #tpu.pipeline_mode<synchronous>, transform_indices = @transform_11, window_bounds = array<i64: 16, 32>}]} {
    %c0_i32 = arith.constant 0 : i32
    %0 = arith.cmpi eq, %arg0, %c0_i32 : i32
    %1 = arith.extui %0 : i1 to i32
    %c0_i32_0 = arith.constant 0 : i32
    %2 = arith.cmpi ne, %1, %c0_i32_0 : i32
    scf.if %2 {
      %c0_55 = arith.constant 0 : index
      %c0_56 = arith.constant 0 : index
      %179 = vector.load %arg2[%c0_55, %c0_56] : memref<16x32xf32, #tpu.memory_space<vmem>>, vector<16x32xf32>
      %c0_57 = arith.constant 0 : index
      %c0_58 = arith.constant 0 : index
      %180 = vector.load %arg13[%c0_57, %c0_58] : memref<16x32xf32, #tpu.memory_space<vmem>>, vector<16x32xf32>
      tpu.vector_store %arg13[%c0_57, %c0_58], %179 {strides = array<i32>} : memref<16x32xf32, #tpu.memory_space<vmem>>, vector<16x32xf32>,
    } else {
    }
    %c0 = arith.constant 0 : index
    %c0_1 = arith.constant 0 : index
    %3 = vector.load %arg13[%c0, %c0_1] : memref<16x32xf32, #tpu.memory_space<vmem>>, vector<16x32xf32>
    %c0_2 = arith.constant 0 : index
    %c0_3 = arith.constant 0 : index
    %c0_4 = arith.constant 0 : index
    %4 = vector.load %arg3[%c0_2, %c0_3, %c0_4] : memref<1x32x96xf32, #tpu.memory_space<vmem>>, vector<1x32x96xf32>
    %5 = vector.shape_cast %4 : vector<1x32x96xf32> to vector<32x96xf32>
    %cst = arith.constant dense<0.000000e+00> : vector<16x96xf32>
    %6 = tpu.matmul %3, %5, %cst {dimension_numbers = #tpu.dot_dimension_numbers<[1], [0], [0], [1], [0, 0, 1, 1], [], []>} : vector<16x32xf32>, vector<32x96xf32>, vector<16x96xf32> -> vector<16x96xf32>
    %7 = vector.extract_strided_slice %6 {offsets = [0, 0], sizes = [8, 96], strides = [1, 1]} : vector<16x96xf32> to vector<8x96xf32>
    %8 = vector.extract_strided_slice %6 {offsets = [8, 0], sizes = [8, 96], strides = [1, 1]} : vector<16x96xf32> to vector<8x96xf32>
    %9 = vector.extract_strided_slice %7 {offsets = [0, 0], sizes = [8, 8], strides = [1, 1]} : vector<8x96xf32> to vector<8x8xf32>
    %10 = vector.extract_strided_slice %7 {offsets = [0, 8], sizes = [8, 8], strides = [1, 1]} : vector<8x96xf32> to vector<8x8xf32>
    %11 = vector.extract_strided_slice %7 {offsets = [0, 16], sizes = [8, 8], strides = [1, 1]} : vector<8x96xf32> to vector<8x8xf32>
    %12 = vector.extract_strided_slice %7 {offsets = [0, 24], sizes = [8, 8], strides = [1, 1]} : vector<8x96xf32> to vector<8x8xf32>
    %13 = vector.extract_strided_slice %8 {offsets = [0, 0], sizes = [8, 8], strides = [1, 1]} : vector<8x96xf32> to vector<8x8xf32>
    %14 = vector.extract_strided_slice %8 {offsets = [0, 8], sizes = [8, 8], strides = [1, 1]} : vector<8x96xf32> to vector<8x8xf32>
    %15 = vector.extract_strided_slice %8 {offsets = [0, 16], sizes = [8, 8], strides = [1, 1]} : vector<8x96xf32> to vector<8x8xf32>
    %16 = vector.extract_strided_slice %8 {offsets = [0, 24], sizes = [8, 8], strides = [1, 1]} : vector<8x96xf32> to vector<8x8xf32>
    %17 = vector.shape_cast %9 : vector<8x8xf32> to vector<1x8x8xf32>
    %18 = vector.shape_cast %10 : vector<8x8xf32> to vector<1x8x8xf32>
    %19 = vector.shape_cast %11 : vector<8x8xf32> to vector<1x8x8xf32>
    %20 = vector.shape_cast %12 : vector<8x8xf32> to vector<1x8x8xf32>
    %21 = vector.shape_cast %13 : vector<8x8xf32> to vector<1x8x8xf32>
    %22 = vector.shape_cast %14 : vector<8x8xf32> to vector<1x8x8xf32>
    %23 = vector.shape_cast %15 : vector<8x8xf32> to vector<1x8x8xf32>
    %24 = vector.shape_cast %16 : vector<8x8xf32> to vector<1x8x8xf32>
    %25 = tpu.concatenate %17, %18, %19, %20, %21, %22, %23, %24 in 0 : vector<1x8x8xf32>, vector<1x8x8xf32>, vector<1x8x8xf32>, vector<1x8x8xf32>, vector<1x8x8xf32>, vector<1x8x8xf32>, vector<1x8x8xf32>, vector<1x8x8xf32> -> vector<8x8x8xf32>
    %26 = vector.extract_strided_slice %7 {offsets = [0, 32], sizes = [8, 8], strides = [1, 1]} : vector<8x96xf32> to vector<8x8xf32>
    %27 = vector.extract_strided_slice %7 {offsets = [0, 40], sizes = [8, 8], strides = [1, 1]} : vector<8x96xf32> to vector<8x8xf32>
    %28 = vector.extract_strided_slice %7 {offsets = [0, 48], sizes = [8, 8], strides = [1, 1]} : vector<8x96xf32> to vector<8x8xf32>
    %29 = vector.extract_strided_slice %7 {offsets = [0, 56], sizes = [8, 8], strides = [1, 1]} : vector<8x96xf32> to vector<8x8xf32>
    %30 = vector.extract_strided_slice %8 {offsets = [0, 32], sizes = [8, 8], strides = [1, 1]} : vector<8x96xf32> to vector<8x8xf32>
    %31 = vector.extract_strided_slice %8 {offsets = [0, 40], sizes = [8, 8], strides = [1, 1]} : vector<8x96xf32> to vector<8x8xf32>
    %32 = vector.extract_strided_slice %8 {offsets = [0, 48], sizes = [8, 8], strides = [1, 1]} : vector<8x96xf32> to vector<8x8xf32>
    %33 = vector.extract_strided_slice %8 {offsets = [0, 56], sizes = [8, 8], strides = [1, 1]} : vector<8x96xf32> to vector<8x8xf32>
    %34 = vector.shape_cast %26 : vector<8x8xf32> to vector<1x8x8xf32>
    %35 = vector.shape_cast %27 : vector<8x8xf32> to vector<1x8x8xf32>
    %36 = vector.shape_cast %28 : vector<8x8xf32> to vector<1x8x8xf32>
    %37 = vector.shape_cast %29 : vector<8x8xf32> to vector<1x8x8xf32>
    %38 = vector.shape_cast %30 : vector<8x8xf32> to vector<1x8x8xf32>
    %39 = vector.shape_cast %31 : vector<8x8xf32> to vector<1x8x8xf32>
    %40 = vector.shape_cast %32 : vector<8x8xf32> to vector<1x8x8xf32>
    %41 = vector.shape_cast %33 : vector<8x8xf32> to vector<1x8x8xf32>
    %42 = tpu.concatenate %34, %35, %36, %37, %38, %39, %40, %41 in 0 : vector<1x8x8xf32>, vector<1x8x8xf32>, vector<1x8x8xf32>, vector<1x8x8xf32>, vector<1x8x8xf32>, vector<1x8x8xf32>, vector<1x8x8xf32>, vector<1x8x8xf32> -> vector<8x8x8xf32>
    %43 = vector.extract_strided_slice %7 {offsets = [0, 64], sizes = [8, 8], strides = [1, 1]} : vector<8x96xf32> to vector<8x8xf32>
    %44 = vector.extract_strided_slice %7 {offsets = [0, 72], sizes = [8, 8], strides = [1, 1]} : vector<8x96xf32> to vector<8x8xf32>
    %45 = vector.extract_strided_slice %7 {offsets = [0, 80], sizes = [8, 8], strides = [1, 1]} : vector<8x96xf32> to vector<8x8xf32>
    %46 = vector.extract_strided_slice %7 {offsets = [0, 88], sizes = [8, 8], strides = [1, 1]} : vector<8x96xf32> to vector<8x8xf32>
    %47 = vector.extract_strided_slice %8 {offsets = [0, 64], sizes = [8, 8], strides = [1, 1]} : vector<8x96xf32> to vector<8x8xf32>
    %48 = vector.extract_strided_slice %8 {offsets = [0, 72], sizes = [8, 8], strides = [1, 1]} : vector<8x96xf32> to vector<8x8xf32>
    %49 = vector.extract_strided_slice %8 {offsets = [0, 80], sizes = [8, 8], strides = [1, 1]} : vector<8x96xf32> to vector<8x8xf32>
    %50 = vector.extract_strided_slice %8 {offsets = [0, 88], sizes = [8, 8], strides = [1, 1]} : vector<8x96xf32> to vector<8x8xf32>
    %51 = vector.shape_cast %43 : vector<8x8xf32> to vector<1x8x8xf32>
    %52 = vector.shape_cast %44 : vector<8x8xf32> to vector<1x8x8xf32>
    %53 = vector.shape_cast %45 : vector<8x8xf32> to vector<1x8x8xf32>
    %54 = vector.shape_cast %46 : vector<8x8xf32> to vector<1x8x8xf32>
    %55 = vector.shape_cast %47 : vector<8x8xf32> to vector<1x8x8xf32>
    %56 = vector.shape_cast %48 : vector<8x8xf32> to vector<1x8x8xf32>
    %57 = vector.shape_cast %49 : vector<8x8xf32> to vector<1x8x8xf32>
    %58 = vector.shape_cast %50 : vector<8x8xf32> to vector<1x8x8xf32>
    %59 = tpu.concatenate %51, %52, %53, %54, %55, %56, %57, %58 in 0 : vector<1x8x8xf32>, vector<1x8x8xf32>, vector<1x8x8xf32>, vector<1x8x8xf32>, vector<1x8x8xf32>, vector<1x8x8xf32>, vector<1x8x8xf32>, vector<1x8x8xf32> -> vector<8x8x8xf32>
    "tpu.trace_start"() <{level = 10 : i32, message = "gqd,gkd->gqk"}> : () -> ()
    %cst_5 = arith.constant dense<0.000000e+00> : vector<8x8x8xf32>
    %60 = tpu.matmul %25, %42, %cst_5 {dimension_numbers = #tpu.dot_dimension_numbers<[2], [2], [1], [1], [0, 0, 0, 1, 1, 1], [0], [0]>} : vector<8x8x8xf32>, vector<8x8x8xf32>, vector<8x8x8xf32> -> vector<8x8x8xf32>
    "tpu.trace_stop"() : () -> ()
    %61 = tpu.iota {dimensions = array<i32: 2>} : vector<4x8x8xi32>
    %62 = vector.extract_strided_slice %60 {offsets = [0, 0, 0], sizes = [4, 8, 8], strides = [1, 1, 1]} : vector<8x8x8xf32> to vector<4x8x8xf32>
    %c0_6 = arith.constant 0 : index
    %63 = memref.load %arg1[%c0_6] : memref<2xi32, #tpu.memory_space<smem>>
    %64 = vector.broadcast %63 : i32 to vector<4x8x8xi32>
    %65 = arith.cmpi slt, %61, %64 : vector<4x8x8xi32>
    %cst_7 = arith.constant -1.000000e+06 : f32
    %66 = vector.broadcast %cst_7 : f32 to vector<4x8x8xf32>
    %67 = arith.select %65, %62, %66 : vector<4x8x8xi1>, vector<4x8x8xf32>
    %68 = vector.extract_strided_slice %60 {offsets = [4, 0, 0], sizes = [4, 8, 8], strides = [1, 1, 1]} : vector<8x8x8xf32> to vector<4x8x8xf32>
    %c1 = arith.constant 1 : index
    %69 = memref.load %arg1[%c1] : memref<2xi32, #tpu.memory_space<smem>>
    %70 = vector.broadcast %69 : i32 to vector<4x8x8xi32>
    %71 = arith.cmpi slt, %61, %70 : vector<4x8x8xi32>
    %cst_8 = arith.constant -1.000000e+06 : f32
    %72 = vector.broadcast %cst_8 : f32 to vector<4x8x8xf32>
    %73 = arith.select %71, %68, %72 : vector<4x8x8xi1>, vector<4x8x8xf32>
    %74 = tpu.concatenate %67, %73 in 0 : vector<4x8x8xf32>, vector<4x8x8xf32> -> vector<8x8x8xf32>
    %cst_9 = arith.constant dense<0xFF800000> : vector<8x8xf32>
    %75 = vector.multi_reduction <maximumf>, %74, %cst_9 [2] : vector<8x8x8xf32> to vector<8x8xf32>
    %76 = vector.shape_cast %75 : vector<8x8xf32> to vector<8x8x1xf32>
    %77 = vector.broadcast %76 : vector<8x8x1xf32> to vector<8x8x8xf32>
    %78 = arith.subf %74, %77 : vector<8x8x8xf32>
    %79 = math.exp %78 : vector<8x8x8xf32>
    %cst_10 = arith.constant dense<0.000000e+00> : vector<8x8xf32>
    %80 = vector.multi_reduction <add>, %79, %cst_10 [2] : vector<8x8x8xf32> to vector<8x8xf32>
    %81 = vector.shape_cast %80 : vector<8x8xf32> to vector<8x8x1xf32>
    %82 = tpu.reciprocal %81 : vector<8x8x1xf32> -> vector<8x8x1xf32>
    %83 = vector.broadcast %82 : vector<8x8x1xf32> to vector<8x8x8xf32>
    %84 = arith.mulf %79, %83 : vector<8x8x8xf32>
    "tpu.trace_start"() <{level = 10 : i32, message = "gqk,gkd->gqd"}> : () -> ()
    %cst_11 = arith.constant dense<0.000000e+00> : vector<8x8x8xf32>
    %85 = tpu.matmul %84, %59, %cst_11 {dimension_numbers = #tpu.dot_dimension_numbers<[2], [1], [1], [2], [0, 0, 0, 1, 1, 2], [0], [0]>} : vector<8x8x8xf32>, vector<8x8x8xf32>, vector<8x8x8xf32> -> vector<8x8x8xf32>
    "tpu.trace_stop"() : () -> ()
    %86 = vector.extract_strided_slice %85 {offsets = [0, 0, 0], sizes = [1, 8, 8], strides = [1, 1, 1]} : vector<8x8x8xf32> to vector<1x8x8xf32>
    %87 = vector.shape_cast %86 : vector<1x8x8xf32> to vector<8x8xf32>
    %88 = vector.extract_strided_slice %85 {offsets = [1, 0, 0], sizes = [1, 8, 8], strides = [1, 1, 1]} : vector<8x8x8xf32> to vector<1x8x8xf32>
    %89 = vector.shape_cast %88 : vector<1x8x8xf32> to vector<8x8xf32>
    %90 = vector.extract_strided_slice %85 {offsets = [2, 0, 0], sizes = [1, 8, 8], strides = [1, 1, 1]} : vector<8x8x8xf32> to vector<1x8x8xf32>
    %91 = vector.shape_cast %90 : vector<1x8x8xf32> to vector<8x8xf32>
    %92 = vector.extract_strided_slice %85 {offsets = [3, 0, 0], sizes = [1, 8, 8], strides = [1, 1, 1]} : vector<8x8x8xf32> to vector<1x8x8xf32>
    %93 = vector.shape_cast %92 : vector<1x8x8xf32> to vector<8x8xf32>
    %94 = tpu.concatenate %87, %89, %91, %93 in 1 : vector<8x8xf32>, vector<8x8xf32>, vector<8x8xf32>, vector<8x8xf32> -> vector<8x32xf32>
    %95 = vector.extract_strided_slice %85 {offsets = [4, 0, 0], sizes = [1, 8, 8], strides = [1, 1, 1]} : vector<8x8x8xf32> to vector<1x8x8xf32>
    %96 = vector.shape_cast %95 : vector<1x8x8xf32> to vector<8x8xf32>
    %97 = vector.extract_strided_slice %85 {offsets = [5, 0, 0], sizes = [1, 8, 8], strides = [1, 1, 1]} : vector<8x8x8xf32> to vector<1x8x8xf32>
    %98 = vector.shape_cast %97 : vector<1x8x8xf32> to vector<8x8xf32>
    %99 = vector.extract_strided_slice %85 {offsets = [6, 0, 0], sizes = [1, 8, 8], strides = [1, 1, 1]} : vector<8x8x8xf32> to vector<1x8x8xf32>
    %100 = vector.shape_cast %99 : vector<1x8x8xf32> to vector<8x8xf32>
    %101 = vector.extract_strided_slice %85 {offsets = [7, 0, 0], sizes = [1, 8, 8], strides = [1, 1, 1]} : vector<8x8x8xf32> to vector<1x8x8xf32>
    %102 = vector.shape_cast %101 : vector<1x8x8xf32> to vector<8x8xf32>
    %103 = tpu.concatenate %96, %98, %100, %102 in 1 : vector<8x8xf32>, vector<8x8xf32>, vector<8x8xf32>, vector<8x8xf32> -> vector<8x32xf32>
    %104 = tpu.concatenate %94, %103 in 0 : vector<8x32xf32>, vector<8x32xf32> -> vector<16x32xf32>
    %c0_12 = arith.constant 0 : index
    %c0_13 = arith.constant 0 : index
    %c0_14 = arith.constant 0 : index
    %105 = vector.load %arg4[%c0_12, %c0_13, %c0_14] : memref<1x32x32xf32, #tpu.memory_space<vmem>>, vector<1x32x32xf32>
    %106 = vector.shape_cast %105 : vector<1x32x32xf32> to vector<32x32xf32>
    %cst_15 = arith.constant dense<0.000000e+00> : vector<16x32xf32>
    %107 = tpu.matmul %104, %106, %cst_15 {dimension_numbers = #tpu.dot_dimension_numbers<[1], [0], [0], [1], [0, 0, 1, 1], [], []>} : vector<16x32xf32>, vector<32x32xf32>, vector<16x32xf32> -> vector<16x32xf32>
    %108 = arith.addf %3, %107 : vector<16x32xf32>
    %cst_16 = arith.constant dense<0.000000e+00> : vector<16xf32>
    %109 = vector.multi_reduction <add>, %108, %cst_16 [1] : vector<16x32xf32> to vector<16xf32>
    %110 = vector.shape_cast %109 : vector<16xf32> to vector<16x1xf32>
    %cst_17 = arith.constant 3.200000e+01 : f32
    %111 = vector.broadcast %cst_17 : f32 to vector<16x1xf32>
    %112 = arith.divf %110, %111 : vector<16x1xf32>
    %113 = vector.broadcast %112 : vector<16x1xf32> to vector<16x32xf32>
    %114 = arith.subf %108, %113 : vector<16x32xf32>
    %115 = arith.mulf %114, %114 : vector<16x32xf32>
    %cst_18 = arith.constant dense<0.000000e+00> : vector<16xf32>
    %116 = vector.multi_reduction <add>, %115, %cst_18 [1] : vector<16x32xf32> to vector<16xf32>
    %117 = vector.shape_cast %116 : vector<16xf32> to vector<16x1xf32>
    %cst_19 = arith.constant 3.200000e+01 : f32
    %118 = vector.broadcast %cst_19 : f32 to vector<16x1xf32>
    %119 = arith.divf %117, %118 : vector<16x1xf32>
    %120 = vector.broadcast %112 : vector<16x1xf32> to vector<16x32xf32>
    %121 = arith.subf %108, %120 : vector<16x32xf32>
    %cst_20 = arith.constant 9.99999974E-6 : f32
    %122 = vector.broadcast %cst_20 : f32 to vector<16x1xf32>
    %123 = arith.addf %119, %122 : vector<16x1xf32>
    %124 = math.rsqrt %123 : vector<16x1xf32>
    %125 = vector.broadcast %124 : vector<16x1xf32> to vector<16x32xf32>
    %126 = arith.mulf %121, %125 : vector<16x32xf32>
    %c0_21 = arith.constant 0 : index
    %c0_22 = arith.constant 0 : index
    %c0_23 = arith.constant 0 : index
    %127 = vector.load %arg5[%c0_21, %c0_22, %c0_23] : memref<1x1x32xf32, #tpu.memory_space<vmem>>, vector<1x1x32xf32>
    %128 = vector.shape_cast %127 : vector<1x1x32xf32> to vector<1x32xf32>
    %129 = vector.broadcast %128 : vector<1x32xf32> to vector<16x32xf32>
    %130 = arith.mulf %126, %129 : vector<16x32xf32>
    %c0_24 = arith.constant 0 : index
    %c0_25 = arith.constant 0 : index
    %c0_26 = arith.constant 0 : index
    %131 = vector.load %arg6[%c0_24, %c0_25, %c0_26] : memref<1x1x32xf32, #tpu.memory_space<vmem>>, vector<1x1x32xf32>
    %132 = vector.shape_cast %131 : vector<1x1x32xf32> to vector<1x32xf32>
    %133 = vector.broadcast %132 : vector<1x32xf32> to vector<16x32xf32>
    %134 = arith.addf %130, %133 : vector<16x32xf32>
    %c0_27 = arith.constant 0 : index
    %c0_28 = arith.constant 0 : index
    %c0_29 = arith.constant 0 : index
    %135 = vector.load %arg7[%c0_27, %c0_28, %c0_29] : memref<1x32x64xf32, #tpu.memory_space<vmem>>, vector<1x32x64xf32>
    %136 = vector.shape_cast %135 : vector<1x32x64xf32> to vector<32x64xf32>
    %cst_30 = arith.constant dense<0.000000e+00> : vector<16x64xf32>
    %137 = tpu.matmul %134, %136, %cst_30 {dimension_numbers = #tpu.dot_dimension_numbers<[1], [0], [0], [1], [0, 0, 1, 1], [], []>} : vector<16x32xf32>, vector<32x64xf32>, vector<16x64xf32> -> vector<16x64xf32>
    %c0_31 = arith.constant 0 : index
    %c0_32 = arith.constant 0 : index
    %c0_33 = arith.constant 0 : index
    %138 = vector.load %arg8[%c0_31, %c0_32, %c0_33] : memref<1x1x64xf32, #tpu.memory_space<vmem>>, vector<1x1x64xf32>
    %139 = vector.shape_cast %138 : vector<1x1x64xf32> to vector<1x64xf32>
    %140 = vector.broadcast %139 : vector<1x64xf32> to vector<16x64xf32>
    %141 = arith.addf %137, %140 : vector<16x64xf32>
    %cst_34 = arith.constant 0.000000e+00 : f32
    %142 = vector.broadcast %cst_34 : f32 to vector<16x64xf32>
    %143 = arith.maximumf %141, %142 : vector<16x64xf32>
    %c0_35 = arith.constant 0 : index
    %c0_36 = arith.constant 0 : index
    %c0_37 = arith.constant 0 : index
    %144 = vector.load %arg9[%c0_35, %c0_36, %c0_37] : memref<1x64x32xf32, #tpu.memory_space<vmem>>, vector<1x64x32xf32>
    %145 = vector.shape_cast %144 : vector<1x64x32xf32> to vector<64x32xf32>
    %cst_38 = arith.constant dense<0.000000e+00> : vector<16x32xf32>
    %146 = tpu.matmul %143, %145, %cst_38 {dimension_numbers = #tpu.dot_dimension_numbers<[1], [0], [0], [1], [0, 0, 1, 1], [], []>} : vector<16x64xf32>, vector<64x32xf32>, vector<16x32xf32> -> vector<16x32xf32>
    %c0_39 = arith.constant 0 : index
    %c0_40 = arith.constant 0 : index
    %c0_41 = arith.constant 0 : index
    %147 = vector.load %arg10[%c0_39, %c0_40, %c0_41] : memref<1x1x32xf32, #tpu.memory_space<vmem>>, vector<1x1x32xf32>
    %148 = vector.shape_cast %147 : vector<1x1x32xf32> to vector<1x32xf32>
    %149 = vector.broadcast %148 : vector<1x32xf32> to vector<16x32xf32>
    %150 = arith.addf %146, %149 : vector<16x32xf32>
    %151 = arith.addf %134, %150 : vector<16x32xf32>
    %cst_42 = arith.constant dense<0.000000e+00> : vector<16xf32>
    %152 = vector.multi_reduction <add>, %151, %cst_42 [1] : vector<16x32xf32> to vector<16xf32>
    %153 = vector.shape_cast %152 : vector<16xf32> to vector<16x1xf32>
    %cst_43 = arith.constant 3.200000e+01 : f32
    %154 = vector.broadcast %cst_43 : f32 to vector<16x1xf32>
    %155 = arith.divf %153, %154 : vector<16x1xf32>
    %156 = vector.broadcast %155 : vector<16x1xf32> to vector<16x32xf32>
    %157 = arith.subf %151, %156 : vector<16x32xf32>
    %158 = arith.mulf %157, %157 : vector<16x32xf32>
    %cst_44 = arith.constant dense<0.000000e+00> : vector<16xf32>
    %159 = vector.multi_reduction <add>, %158, %cst_44 [1] : vector<16x32xf32> to vector<16xf32>
    %160 = vector.shape_cast %159 : vector<16xf32> to vector<16x1xf32>
    %cst_45 = arith.constant 3.200000e+01 : f32
    %161 = vector.broadcast %cst_45 : f32 to vector<16x1xf32>
    %162 = arith.divf %160, %161 : vector<16x1xf32>
    %163 = vector.broadcast %155 : vector<16x1xf32> to vector<16x32xf32>
    %164 = arith.subf %151, %163 : vector<16x32xf32>
    %cst_46 = arith.constant 9.99999974E-6 : f32
    %165 = vector.broadcast %cst_46 : f32 to vector<16x1xf32>
    %166 = arith.addf %162, %165 : vector<16x1xf32>
    %167 = math.rsqrt %166 : vector<16x1xf32>
    %168 = vector.broadcast %167 : vector<16x1xf32> to vector<16x32xf32>
    %169 = arith.mulf %164, %168 : vector<16x32xf32>
    %c0_47 = arith.constant 0 : index
    %c0_48 = arith.constant 0 : index
    %c0_49 = arith.constant 0 : index
    %170 = vector.load %arg11[%c0_47, %c0_48, %c0_49] : memref<1x1x32xf32, #tpu.memory_space<vmem>>, vector<1x1x32xf32>
    %171 = vector.shape_cast %170 : vector<1x1x32xf32> to vector<1x32xf32>
    %172 = vector.broadcast %171 : vector<1x32xf32> to vector<16x32xf32>
    %173 = arith.mulf %169, %172 : vector<16x32xf32>
    %c0_50 = arith.constant 0 : index
    %c0_51 = arith.constant 0 : index
    %c0_52 = arith.constant 0 : index
    %174 = vector.load %arg12[%c0_50, %c0_51, %c0_52] : memref<1x1x32xf32, #tpu.memory_space<vmem>>, vector<1x1x32xf32>
    %175 = vector.shape_cast %174 : vector<1x1x32xf32> to vector<1x32xf32>
    %176 = vector.broadcast %175 : vector<1x32xf32> to vector<16x32xf32>
    %177 = arith.addf %173, %176 : vector<16x32xf32>
    %c0_53 = arith.constant 0 : index
    %c0_54 = arith.constant 0 : index
    %178 = vector.load %arg13[%c0_53, %c0_54] : memref<16x32xf32, #tpu.memory_space<vmem>>, vector<16x32xf32>
    tpu.vector_store %arg13[%c0_53, %c0_54], %177 {strides = array<i32>} : memref<16x32xf32, #tpu.memory_space<vmem>>, vector<16x32xf32>,
    return
  }
  func.func @transform_0(%arg0: i32, %arg1: memref<2xi32, #tpu.memory_space<smem>>) -> (i32, i32) {
    %c0_i32 = arith.constant 0 : i32
    %c0_i32_0 = arith.constant 0 : i32
    %c0_i32_1 = arith.constant 0 : i32
    return %c0_i32, %c0_i32_0 : i32, i32
  }
  func.func @transform_1(%arg0: i32, %arg1: memref<2xi32, #tpu.memory_space<smem>>) -> (i32, i32, i32) {
    %c0_i32 = arith.constant 0 : i32
    %c0_i32_0 = arith.constant 0 : i32
    %c0_i32_1 = arith.constant 0 : i32
    return %arg0, %c0_i32, %c0_i32_0 : i32, i32, i32
  }
  func.func @transform_2(%arg0: i32, %arg1: memref<2xi32, #tpu.memory_space<smem>>) -> (i32, i32, i32) {
    %c0_i32 = arith.constant 0 : i32
    %c0_i32_0 = arith.constant 0 : i32
    %c0_i32_1 = arith.constant 0 : i32
    return %arg0, %c0_i32, %c0_i32_0 : i32, i32, i32
  }
  func.func @transform_3(%arg0: i32, %arg1: memref<2xi32, #tpu.memory_space<smem>>) -> (i32, i32, i32) {
    %c0_i32 = arith.constant 0 : i32
    %c0_i32_0 = arith.constant 0 : i32
    %c0_i32_1 = arith.constant 0 : i32
    return %arg0, %c0_i32, %c0_i32_0 : i32, i32, i32
  }
  func.func @transform_4(%arg0: i32, %arg1: memref<2xi32, #tpu.memory_space<smem>>) -> (i32, i32, i32) {
    %c0_i32 = arith.constant 0 : i32
    %c0_i32_0 = arith.constant 0 : i32
    %c0_i32_1 = arith.constant 0 : i32
    return %arg0, %c0_i32, %c0_i32_0 : i32, i32, i32
  }
  func.func @transform_5(%arg0: i32, %arg1: memref<2xi32, #tpu.memory_space<smem>>) -> (i32, i32, i32) {
    %c0_i32 = arith.constant 0 : i32
    %c0_i32_0 = arith.constant 0 : i32
    %c0_i32_1 = arith.constant 0 : i32
    return %arg0, %c0_i32, %c0_i32_0 : i32, i32, i32
  }
  func.func @transform_6(%arg0: i32, %arg1: memref<2xi32, #tpu.memory_space<smem>>) -> (i32, i32, i32) {
    %c0_i32 = arith.constant 0 : i32
    %c0_i32_0 = arith.constant 0 : i32
    %c0_i32_1 = arith.constant 0 : i32
    return %arg0, %c0_i32, %c0_i32_0 : i32, i32, i32
  }
  func.func @transform_7(%arg0: i32, %arg1: memref<2xi32, #tpu.memory_space<smem>>) -> (i32, i32, i32) {
    %c0_i32 = arith.constant 0 : i32
    %c0_i32_0 = arith.constant 0 : i32
    %c0_i32_1 = arith.constant 0 : i32
    return %arg0, %c0_i32, %c0_i32_0 : i32, i32, i32
  }
  func.func @transform_8(%arg0: i32, %arg1: memref<2xi32, #tpu.memory_space<smem>>) -> (i32, i32, i32) {
    %c0_i32 = arith.constant 0 : i32
    %c0_i32_0 = arith.constant 0 : i32
    %c0_i32_1 = arith.constant 0 : i32
    return %arg0, %c0_i32, %c0_i32_0 : i32, i32, i32
  }
  func.func @transform_9(%arg0: i32, %arg1: memref<2xi32, #tpu.memory_space<smem>>) -> (i32, i32, i32) {
    %c0_i32 = arith.constant 0 : i32
    %c0_i32_0 = arith.constant 0 : i32
    %c0_i32_1 = arith.constant 0 : i32
    return %arg0, %c0_i32, %c0_i32_0 : i32, i32, i32
  }
  func.func @transform_10(%arg0: i32, %arg1: memref<2xi32, #tpu.memory_space<smem>>) -> (i32, i32, i32) {
    %c0_i32 = arith.constant 0 : i32
    %c0_i32_0 = arith.constant 0 : i32
    %c0_i32_1 = arith.constant 0 : i32
    return %arg0, %c0_i32, %c0_i32_0 : i32, i32, i32
  }
  func.func @transform_11(%arg0: i32, %arg1: memref<2xi32, #tpu.memory_space<smem>>) -> (i32, i32) {
    %c0_i32 = arith.constant 0 : i32
    %c0_i32_0 = arith.constant 0 : i32
    %c0_i32_1 = arith.constant 0 : i32
    return %c0_i32, %c0_i32_0 : i32, i32
  }
}

</mosaic_0001>

<bundles_post_ra>
// kernel: _lambda_.1
= control target key start
LH: loop header
LB: loop body
LE: loop exit
PB: predicated region body
PF: predicated region fallthrough
CT: control target
= control target key end

     0   :  { %s3616_s0 = inlined_call_operand.vmem [shape: s32[2], index: 0, kind: input, shape index: {}]   ;;  %s3617_s1 = inlined_call_operand.vmem [shape: f32[16,32], index: 1, kind: input, shape index: {}]   ;;  %s3618_s2 = inlined_call_operand.vmem [shape: f32[2,32,96], index: 2, kind: input, shape index: {}]   ;;  %s3619_s3 = inlined_call_operand.hbm [shape: f32[2,32,32], index: 3, kind: input, shape index: {}]   ;;  %s3620_s4 = inlined_call_operand.vmem [shape: f32[2,1,32], index: 4, kind: input, shape index: {}]   ;;  %s3621_s5 = inlined_call_operand.vmem [shape: f32[2,1,32], index: 5, kind: input, shape index: {}]   ;;  %s3622_s6 = inlined_call_operand.hbm [shape: f32[2,32,64], index: 6, kind: input, shape index: {}]   ;;  %s3623_s7 = inlined_call_operand.vmem [shape: f32[2,1,64], index: 7, kind: input, shape index: {}]   ;;  %s3624_s8 = inlined_call_operand.vmem [shape: f32[2,64,32], index: 8, kind: input, shape index: {}]   ;;  %s3625_s9 = inlined_call_operand.vmem [shape: f32[2,1,32], index: 9, kind: input, shape index: {}]   ;;  %s3626_s10 = inlined_call_operand.vmem [shape: f32[2,1,32], index: 10, kind: input, shape index: {}]   ;;  %s3627_s11 = inlined_call_operand.vmem [shape: f32[2,1,32], index: 11, kind: input, shape index: {}]   ;;  %s3628_s12 = inlined_call_operand.hbm [shape: f32[16,32], index: 12, kind: output, shape index: {}]  }
   0x1   :  { %3636 = sst [smem:[#allocation18_spill]] %s3619_s3  ;;  %s17_s23 = sshll.u32 %s3616_s0, 4  ;;  %s18_s23 = int_to_ptr.vmem [resolvable:$true] %s17_s23 }
   0x2   :  { %3637 = sst [smem:[#allocation19_spill]] %s3622_s6  ;;  %s2920_s24 = scalar_lea.vmem %s18_s23, 16 }
   0x3   :  { %p2921_p0 = scmp.ne.s32.totalorder %s18_s23, %s2920_s24  ;;  %p2925_p1 = scmp.lt.s32.totalorder %s18_s23, %s18_s23 }
   0x4   :  { %p2926_p2 = scmp.lt.s32.totalorder %s2920_s24, %s2920_s24 }
   0x6   :  { %p2927_p3 = por %p2926_p2, %p2925_p1 }
   0x8   :  { %p2928_p4 = pnand %p2927_p3, %p2921_p0 }
   0xa   :  { %2931 = shalt.err (!%p2928_p4)  }
   0xb   :  { %s3058_s25 = smov [#allocation3]  }
   0xc   :  { %20 = dma.vmem_to_smem %s18_s23, 16, %s3058_s25, [#allocation2] }
   0xd   :  { %3028 = dma.done.wait [#allocation2], 16 }
   0xe   :  { %3029 = vsyncadd [#allocation2], 4294967280 }
   0xf   :  { %22 = sfence }
  0x10   :  { %23 = vsyncpa [#allocation5], 0 }
  0x11   :  { %25 = vsyncpa [#allocation5 + $0x1], 0 }
  0x12   :  { %26 = vsyncpa [#allocation8], 0 }
  0x13   :  { %28 = vsyncpa [#allocation8 + $0x1], 0 }
  0x14   :  { %29 = vsyncpa [#allocation6], 0  ;;  %s3143_s26 = smov 0   ;;  %s3145_s0 = smov 0  }
  0x15   :  { %s3147_s27 = smov 0   ;;  %s3149_s28 = smov 0  }
  0x16 LB: > { %3638 = sst [smem:[#allocation14_spill]] %s3048_s0  ;;  %s3162_s29 = sadd.s32 4294967295, %s3056_s28   ;;  %s3056_s28 = sphi %s3149_s28, %s3658_s28   ;;  %s3052_s27 = sphi %s3147_s27, %s3661_s27   ;;  %s3048_s0 = sphi %s3145_s0, %s3660_s0   ;;  %s3044_s26 = sphi %s3143_s26, %s3659_s26  }
  0x17   : > { %3639 = sst [smem:[#allocation15_spill]] %s3052_s27  ;;  %s3165_s30 = sadd.s32 1, %s3056_s28  }
  0x18   : > { %3640 = sst [smem:[#allocation16_spill]] %s3165_s30  ;;  %s86_s13 = ssub.s32 %s3056_s28, %s3165_s30 }
  0x19   : > { %s89_s14 = sadd.s32 1, %s3052_s27  ;;  %p87_p5 = scmp.eq.s32.totalorder %s86_s13, 0 }
  0x1a   : > { %p96_p6 = scmp.ne.s32.totalorder %s3052_s27, %s3048_s0  ;;  %p97_p7 = scmp.eq.s32.totalorder %s3056_s28, 0 }
  0x1b   : > { %p102_p8 = scmp.ne.s32.totalorder %s3048_s0, %s3044_s26  ;;  %p103_p10 = scmp.eq.s32.totalorder %s3162_s29, 0 }
  0x1c   : > { %s3175_s15 = scalar_select %p87_p5, %s3052_s27, %s89_s14  }
  0x1d   : > { %p98_p9 = por %p97_p7, %p96_p6  ;;  %p2830_p11 = scmp.lt.s32.totalorder %s3056_s28, 2 }
  0x1e   : > { %3641 = sst [smem:[#allocation17_spill]] %s3175_s15  ;;  %p3179_p12 = por %p103_p10, %p102_p8 }
  0x1f   : > { %s3184_s17 = sand.u32 1, %s3052_s27   ;;  %s3630_s19 = sshll.u32 %s3056_s28, 9 }
  0x20   : > { %s3642_s16 = scalar_select %p3179_p12, 1, 0 }
  0x21   : > { %s3629_s18 = sshll.u32 %s3184_s17, 5  ;;  %s3643_s3 = sld [smem:[#allocation18_spill]] }
  0x22   : > { %s370_s23 = scalar_lea.vmem [#allocation4], %s3629_s18  ;;  %p3199_p13 = pnand %p2830_p11, %p98_p9 }
  0x23   : > { %s377_s24 = sshll.u32 %s370_s23, 4  ;;  %s3197_s24 = int_to_ptr.vmem [resolvable:$true] %s377_s24 }
  0x24   : > { %p2934_p2 = pneg %p3199_p13 }
  0x27   : > { %s3193_s22 = scalar_lea.hbm %s3643_s3, %s3630_s19  ;;  %s2937_s21 = scalar_lea.hbm %s3643_s3, 1024 }
  0x28   : > { %s2932_s13 = scalar_lea.hbm %s3193_s22, 512  ;;  %p2938_p5 = scmp.lt.s32.totalorder %s3193_s22, %s3643_s3 }
  0x29   : > { %p2933_p1 = scmp.ne.s32.totalorder %s3193_s22, %s2932_s13  ;;  %p2939_p6 = scmp.lt.s32.totalorder %s2937_s21, %s2932_s13 }
  0x2b   : > { %p2935_p3 = pnand %p2934_p2, %p2933_p1  ;;  %p2940_p7 = por %p2939_p6, %p2938_p5 }
  0x2d   : > { %p2936_p4 = pneg %p2935_p3 }
  0x2f   : > { %p2941_p8 = pnand %p2940_p7, %p2936_p4 }
  0x31   : > { %2944 = shalt.err (!%p2941_p8)
}
  0x32   : > { %s2945_s19 = scalar_lea.vmem %s3197_s24, 512  ;;  %s3059_s14 = smov [#allocation4]  }
  0x33   : > { %p2946_p9 = scmp.ne.s32.totalorder %s3197_s24, %s2945_s19  ;;  %s2950_s20 = sshll.u32 %s3059_s14, 4  ;;  %s2951_s20 = int_to_ptr.vmem [resolvable:$false] %s2950_s20 }
  0x34   : > { %s2952_s26 = scalar_lea.vmem %s2951_s20, 1024  ;;  %p2953_p1 = scmp.lt.s32.totalorder %s3197_s24, %s2951_s20 }
  0x35   : > { %p2948_p10 = pnand %p2946_p9, %p2934_p2  ;;  %p2954_p3 = scmp.lt.s32.totalorder %s2952_s26, %s2945_s19 }
  0x37   : > { %p2949_p11 = pneg %p2948_p10  ;;  %p2955_p0 = por %p2954_p3, %p2953_p1 }
  0x39   : > { %p2956_p5 = pnand %p2955_p0, %p2949_p11 }
  0x3b   : > { %2959 = shalt.err (!%p2956_p5)
}
  0x3c   : > { %s3060_s18 = smov 128   ;;  %s3061_s13 = smov 8  }
  0x3d   : > { %s3645_s19 = scalar_lea.sflag [#allocation5], %s3184_s17  ;;  %p450_p0 = scmp.lt.s32.totalorder %s3056_s28, 3 }
  0x3e   : > { %2826 = dma.hbm_to_vmem [thread:$0]  (!%p3199_p13), %s3193_s22, 512, %s3197_s24, %s3645_s19, %s3060_s18, %s3060_s18, %s3061_s13  }
  0x3f   : > { %s3646_s26 = sshll.u32 %s3056_s28, 9  ;;  %s3647_s6 = sld [smem:[#allocation19_spill]] }
  0x40   : > { %p3648_p4 = scmp.ge.s32.totalorder %s3056_s28, 1  ;;  %s3650_s3 = sshll.u32 %s3184_s17, 5 }
  0x41   : > { %s403_s15 = scalar_lea.vmem [#allocation7], %s3650_s3  ;;  %s400_s22 = scalar_lea.sflag [#allocation8], %s3184_s17 }
  0x42   : > { %p3244_p6 = pnand %p3648_p4, %p450_p0  ;;  %s410_s27 = sshll.u32 %s403_s15, 4  ;;  %s3250_s27 = int_to_ptr.vmem [resolvable:$true] %s410_s27 }
  0x45   : > { %s3240_s14 = scalar_lea.hbm %s3647_s6, %s3646_s26  ;;  %s2965_s26 = scalar_lea.hbm %s3647_s6, 1024 }
  0x46   : > { %s2960_s24 = scalar_lea.hbm %s3240_s14, 512  ;;  %p2966_p10 = scmp.lt.s32.totalorder %s3240_s14, %s3647_s6 }
  0x47   : > { %p2961_p7 = scmp.ne.s32.totalorder %s3240_s14, %s2960_s24  ;;  %p2967_p11 = scmp.lt.s32.totalorder %s2965_s26, %s2960_s24 }
  0x49   : > { %p2963_p8 = pnand %p2961_p7, %p2934_p2  ;;  %p2968_p1 = por %p2967_p11, %p2966_p10 }
  0x4b   : > { %p2964_p9 = pneg %p2963_p8 }
  0x4d   : > { %p2969_p3 = pnand %p2968_p1, %p2964_p9 }
  0x4f   : > { %2972 = shalt.err (!%p2969_p3)
}
  0x50   : > { %s2973_s3 = scalar_lea.vmem %s3250_s27, 512  ;;  %s3062_s15 = smov [#allocation7]  }
  0x51   : > { %p2974_p5 = scmp.ne.s32.totalorder %s3250_s27, %s2973_s3  ;;  %s2978_s17 = sshll.u32 %s3062_s15, 4  ;;  %s2979_s17 = int_to_ptr.vmem [resolvable:$false] %s2978_s17 }
  0x52   : > { %s2980_s28 = scalar_lea.vmem %s2979_s17, 1024  ;;  %p2981_p7 = scmp.lt.s32.totalorder %s3250_s27, %s2979_s17 }
  0x53   : > { %p2976_p0 = pnand %p2974_p5, %p2934_p2  ;;  %p2982_p8 = scmp.lt.s32.totalorder %s2980_s28, %s2973_s3 }
  0x55   : > { %p2977_p4 = pneg %p2976_p0  ;;  %p2983_p12 = por %p2982_p8, %p2981_p7 }
  0x57   : > { %p2984_p10 = pnand %p2983_p12, %p2977_p4 }
  0x59   : > { %2987 = shalt.err (!%p2984_p10)
}
  0x5a   : > { %2829 = dma.hbm_to_vmem [thread:$0]  (!%p3199_p13), %s3240_s14, 512, %s3250_s27, %s400_s22, %s3060_s18, %s3060_s18, %s3061_s13  }
  0x5b   : > { %454 = sbr.rel (%p3244_p6) target bundleno = 2601 (0xa29), region = 64  ;;  %s456_s24 = sand.u32 (!%p3244_p6), 1, %s3048_s0  }
  0x5c   : > { %s2569_s19 = sshll.u32 (!%p3244_p6), %s456_s24, 5  ;;  %s457_s26 = scalar_lea.sflag (!%p3244_p6), [#allocation5], %s456_s24 }
  0x5d   : > { %s3281_s21 = scalar_lea.vmem (!%p3244_p6), [#allocation4], %s2569_s19  ;;  %p3651_p12 = scmp.ne.s32.totalorder (!%p3244_p6), %s3642_s16, 0 }
  0x60   : > { %3031 = dma.done.wait (%p3651_p12), %s457_s26, 512  }
  0x61   : > { %3033 = vsyncadd (%p3651_p12), %s457_s26, 4294966784  ;;  %s466_s25 = scalar_lea.sflag [#allocation8], %s456_s24  ;;  %s3287_s23 = scalar_lea.vmem [#allocation7], %s2569_s19 }
  0x62   : > { %3035 = dma.done.wait (%p3651_p12), %s466_s25, 512  }
  0x63   : > { %3037 = vsyncadd (%p3651_p12), %s466_s25, 4294966784  ;;  %p536_p13 = scmp.lt.s32.totalorder %s3162_s29, 1  ;;  %p2575_p2 = scmp.ne.s32.totalorder %s3162_s29, 0 }
  0x65   : > { %s3295_s27 = scalar_select %p536_p13, %s3162_s29, 1 }
  0x66   : > { %567 = sbr.rel (%p2575_p2) target bundleno = 109 (0x6d), region = 76 }
  0x67   : > { %s2621_s18 = sshll.u32 %s3295_s27, 5  ;;  %s549_s26 = scalar_lea.vmem %s3623_s7, %s3295_s27 }
  0x68   : > { %s540_s3 = scalar_lea.vmem %s3618_s2, %s2621_s18  ;;  %s2622_s25 = sshll.u32 %s3295_s27, 6 }
  0x69   : > { %s3317_s30 = scalar_lea.vmem %s3624_s8, %s2622_s25  ;;  %s557_s20 = scalar_lea.vmem %s3625_s9, %s3295_s27 }
  0x6a   : > { %s560_s22 = scalar_lea.vmem %s3626_s10, %s3295_s27  ;;  %s563_s28 = scalar_lea.vmem %s3627_s11, %s3295_s27 }
  0x6b   : > { %v568_v0 = vld [vmem:[%s3617_s1] sm:$0xff]  ;;  %vm570_vm0 = vcmask 261120   ;;  %v569_v1 = vld [vmem:[%s3617_s1 + $0x8] sm:$0xff] }
  0x6c   : > { %571 = vst.msk [vmem:[#allocation9] sm:$0xff] %vm570_vm0, %v568_v0  ;;  %572 = vst.msk [vmem:[#allocation9 + $0x8] sm:$0xff] %vm570_vm0, %v569_v1 }
  0x6d PF: > { %v578_v2 = vld [vmem:[%s540_s3 + $0x18] sm:$0xff]  ;;  %v577_v3 = vld [vmem:[%s540_s3 + $0x10] sm:$0xff]  ;;  %vm579_vm1 = vcmask 261120   ;;  %v576_v5 = vld [vmem:[%s540_s3 + $0x8] sm:$0xff]  ;;  %v3063_v8 = vmov 0.0   ;;  %s3064_s25 = smov 104   ;;  %v1284_v25 = vlaneseq  ;;  %s3656_s6 = scalar_lea.vmem %s3620_s4, %s3295_s27 }
  0x6e   : > { %2683 = vmatprep.subr.mxu1 %v578_v2  ;;  %v575_v6 = vld [vmem:[%s540_s3] sm:$0xff]  ;;  %2704 = vmatprep.subr.mxu0 %v3063_v8  ;;  %s3065_s3 = smov 120   ;;  %vm3066_vm2 = vmmov 0   ;;  %s3067_s13 = smov 112   ;;  %vm677_vm3 = vcmask 64512   ;;  %vm2009_vm6 = vcmask 130048  }
  0x6f   : > { %2684 = vmatpush3.msra.mxu1 %v578_v2  ;;  %2706 = vmatprep.mubr.msk.f32.mxu0 %vm3066_vm2, %v3063_v8  ;;  %s3068_s14 = smov 96   ;;  %s1286_s16 = sld [smem:[#allocation3]]  ;;  %v1285_v26 = vand.u32 127, %v1284_v25  ;;  %vm2011_vm7 = vcmask 195584   ;;  %vm2269_vm8 = vcmask 523264  }
  0x70   : > { %2685 = vmatprep.subr.mxu1 %v577_v3  ;;  %s2594_s18 = sld [smem:[#allocation3 + $0x1]]  ;;  %s3069_s15 = smov 64  }
  0x71   : > { %2686 = vmatpush3.msra.mxu1 %v577_v3  ;;  %s3070_s17 = smov 8   ;;  %s3071_s24 = smov 16  }
  0x72   : > { %2687 = vmatprep.subr.mxu1 %v576_v5  ;;  %s3072_s19 = smov 24   ;;  %p2831_p6 = scmp.eq.s32.totalorder %s3162_s29, 1 }
  0x73   : > { %v3338_v4 = vld [vmem:[#allocation9] sm:$0xff]  ;;  %2688 = vmatpush3.msra.mxu1 %v576_v5  ;;  %v3342_v7 = vld [vmem:[#allocation9 + $0x8] sm:$0xff] }
  0x74   : > { %2691 = vmatprep.mubr.msk.f32.mxu1 %vm579_vm1, %v3338_v4  ;;  %2689 = vmatprep.subr.mxu1 %v575_v6 }
  0x75   : > { %2690 = vmatpush3.msra.mxu1 %v575_v6  ;;  %v1287_v27 = vstv %s1286_s16 }
  0x76   : > { %2692 = vmatmul.mubr.msk.f32.vlgmr.msra.gmra.mxu1 %vm579_vm1, %v3342_v7  ;;  %2694 = vmatprep.subr.mxu1 %v3063_v8  ;;  %vm3430_vm4 = vcmp.lt.s32.totalorder %v1285_v26, %v1287_v27  ;;  %v1294_v37 = vstv %s2594_s18 }
  0x77   : > { %2696 = vmatprep.mubr.msk.f32.mxu1 %vm3066_vm2, %v3063_v8  ;;  %vm3443_vm5 = vcmp.lt.s32.totalorder %v1285_v26, %v1294_v37 }
 0x136   : > { %v3348_v9 = vpop.f32.mrf.mxu1 }
 0x138   : > { %v3350_v10 = vpop.f32.mrf.mxu1 }
 0x139   : > { %666 = vrot.lane.b32.xlu1 %v3350_v10, %s3064_s25  ;;  %662 = vrot.lane.b32.xlu0 %v3350_v10, %s3065_s3 }
 0x13d   : > { %669 = vrot.lane.b32.xlu1 %v3348_v9, %s3065_s3  ;;  %664 = vrot.lane.b32.xlu0 %v3350_v10, %s3067_s13  ;;  %s3657_s3 = scalar_lea.vmem %s3621_s5, %s3295_s27 }
 0x141   : > { %673 = vrot.lane.b32.xlu1 %v3348_v9, %s3064_s25  ;;  %671 = vrot.lane.b32.xlu0 %v3348_v9, %s3067_s13 }
 0x145   : > { %675 = vrot.lane.b32.xlu0 %v3350_v10, %s3068_s14 }
 0x1ab   : > { %v3363_v11 = vpop.permute.xlu1 %666  ;;  %v3365_v12 = vpop.permute.xlu0 %662 }
 0x1ac   : > { %752 = vrot.lane.b32.xlu1 %v3365_v12, %s3068_s14 }
 0x1af   : > { %v3368_v13 = vpop.permute.xlu0 %664  ;;  %v3372_v14 = vpop.permute.xlu1 %669 }
 0x1b0   : > { %904 = vrot.lane.b32.xlu1 %v3363_v11, %s3068_s14  ;;  %828 = vrot.lane.b32.xlu0 %v3368_v13, %s3068_s14 }
 0x1b3   : > { %v3374_v15 = vpop.permute.xlu0 %671  ;;  %v3378_v16 = vpop.permute.xlu1 %673 }
 0x1b4   : > { %1056 = vrot.lane.b32.xlu1 %v3372_v14, %s3068_s14  ;;  %980 = vrot.lane.b32.xlu0 %v3348_v9, %s3068_s14 }
 0x1b7   : > { %v676_v17 = vpop.permute.xlu0 %675 }
 0x1b8   : > { %1208 = vrot.lane.b32.xlu1 %v3378_v16, %s3068_s14  ;;  %1132 = vrot.lane.b32.xlu0 %v3374_v15, %s3068_s14 }
 0x1b9   : > { %2695 = vmatpush3.xpose.msk.msra.mxu1 %vm677_vm3, %v676_v17 }
 0x1ba   : > { %2699 = vmatprep.subr.mxu1 %v3063_v8 }
 0x1bc   : > { %2697 = vmatmul.mubr.msk.f32.vlgmr.msra.gmra.mxu1 %vm677_vm3, %v3350_v10 }
 0x1bd   : > { %2701 = vmatprep.mubr.msk.f32.mxu1 %vm3066_vm2, %v3063_v8 }
 0x21e   : > { %v753_v18 = vpop.permute.xlu1 %752 }
 0x21f   : > { %2700 = vmatpush3.xpose.msk.msra.mxu1 %vm677_vm3, %v753_v18 }
 0x220   : > { %2709 = vmatprep.subr.mxu1 %v3063_v8 }
 0x222   : > { %v905_v19 = vpop.permute.xlu1 %904  ;;  %2702 = vmatmul.mubr.msk.f32.vlgmr.msra.gmra.mxu1 %vm677_vm3, %v3365_v12  ;;  %v829_v20 = vpop.permute.xlu0 %828 }
 0x223   : > { %2705 = vmatpush3.xpose.msk.msra.mxu0 %vm677_vm3, %v829_v20  ;;  %2710 = vmatpush3.xpose.msk.msra.mxu1 %vm677_vm3, %v905_v19 }
 0x224   : > { %2711 = vmatprep.mubr.msk.f32.mxu1 %vm3066_vm2, %v3063_v8  ;;  %2714 = vmatprep.subr.mxu0 %v3063_v8 }
 0x225   : > { %2719 = vmatprep.subr.mxu1 %v3063_v8 }
 0x226   : > { %v1057_v21 = vpop.permute.xlu1 %1056  ;;  %2707 = vmatmul.mubr.msk.f32.vlgmr.msra.gmra.mxu0 %vm677_vm3, %v3368_v13  ;;  %2712 = vmatmul.mubr.msk.f32.vlgmr.msra.gmra.mxu1 %vm677_vm3, %v3363_v11  ;;  %v981_v22 = vpop.permute.xlu0 %980 }
 0x227   : > { %2715 = vmatpush3.xpose.msk.msra.mxu0 %vm677_vm3, %v981_v22  ;;  %2720 = vmatpush3.xpose.msk.msra.mxu1 %vm677_vm3, %v1057_v21 }
 0x228   : > { %2716 = vmatprep.mubr.msk.f32.mxu0 %vm3066_vm2, %v3063_v8  ;;  %2721 = vmatprep.mubr.msk.f32.mxu1 %vm3066_vm2, %v3063_v8 }
 0x229   : > { %2724 = vmatprep.subr.mxu0 %v3063_v8  ;;  %2729 = vmatprep.subr.mxu1 %v3063_v8 }
 0x22a   : > { %v1209_v23 = vpop.permute.xlu1 %1208  ;;  %2717 = vmatmul.mubr.msk.f32.vlgmr.msra.gmra.mxu0 %vm677_vm3, %v3348_v9  ;;  %2722 = vmatmul.mubr.msk.f32.vlgmr.msra.gmra.mxu1 %vm677_vm3, %v3372_v14  ;;  %v1133_v24 = vpop.permute.xlu0 %1132 }
 0x22b   : > { %2725 = vmatpush3.xpose.msk.msra.mxu0 %vm677_vm3, %v1133_v24  ;;  %2730 = vmatpush3.xpose.msk.msra.mxu1 %vm677_vm3, %v1209_v23 }
 0x22c   : > { %2726 = vmatprep.mubr.msk.f32.mxu0 %vm3066_vm2, %v3063_v8  ;;  %2731 = vmatprep.mubr.msk.f32.mxu1 %vm3066_vm2, %v3063_v8 }
 0x22d   : > { %2734 = vmatprep.subr.mxu0 %v3063_v8  ;;  %2739 = vmatprep.subr.mxu1 %v3063_v8 }
 0x22e   : > { %2727 = vmatmul.mubr.msk.f32.vlgmr.msra.gmra.mxu0 %vm677_vm3, %v3374_v15  ;;  %2732 = vmatmul.mubr.msk.f32.vlgmr.msra.gmra.mxu1 %vm677_vm3, %v3378_v16 }
 0x22f   : > { %2736 = vmatprep.mubr.msk.f32.mxu0 %vm3066_vm2, %v3063_v8  ;;  %2741 = vmatprep.mubr.msk.f32.mxu1 %vm3066_vm2, %v3063_v8 }
 0x27c   : > { %v748_v29 = vpop.f32.mrf.mxu1 }
 0x27d   : > { %v1289_v30 = vsel %vm3430_vm4, %v748_v29, -1000000.0 }
 0x27e   : > { %v2698_v31 = vpop.f32.mrf.mxu1  ;;  %v1300_v32 = vsel %vm677_vm3, %v1289_v30, -inf }
 0x27f   : > { %1301 = vmax.xlane.f32.xlu0 %v1300_v32 }
 0x2e2   : > { %v824_v33 = vpop.f32.mrf.mxu1 }
 0x2e3   : > { %v1290_v34 = vsel %vm3430_vm4, %v824_v33, -1000000.0 }
 0x2e4   : > { %v2703_v35 = vpop.f32.mrf.mxu1  ;;  %v1303_v36 = vsel %vm677_vm3, %v1290_v34, -inf }
 0x2e5   : > { %1304 = vmax.xlane.f32.xlu1 %v1303_v36 }
 0x2e6   : > { %v900_v38 = vpop.f32.mrf.mxu0  ;;  %v976_v39 = vpop.f32.mrf.mxu1 }
 0x2e7   : > { %v1291_v40 = vsel %vm3430_vm4, %v900_v38, -1000000.0  ;;  %v1292_v45 = vsel %vm3430_vm4, %v976_v39, -1000000.0 }
 0x2e8   : > { %v2708_v41 = vpop.f32.mrf.mxu0  ;;  %v2713_v42 = vpop.f32.mrf.mxu1  ;;  %v1306_v43 = vsel %vm677_vm3, %v1291_v40, -inf  ;;  %v1309_v51 = vsel %vm677_vm3, %v1292_v45, -inf }
 0x2e9   : > { %1307 = vmax.xlane.f32.xlu0 %v1306_v43 }
 0x2ea   : > { %v1052_v46 = vpop.f32.mrf.mxu0  ;;  %v1128_v47 = vpop.f32.mrf.mxu1 }
 0x2eb   : > { %v1296_v48 = vsel %vm3443_vm5, %v1052_v46, -1000000.0  ;;  %v1297_v53 = vsel %vm3443_vm5, %v1128_v47, -1000000.0 }
 0x2ec   : > { %v2718_v49 = vpop.f32.mrf.mxu0  ;;  %v2723_v50 = vpop.f32.mrf.mxu1  ;;  %v1312_v52 = vsel %vm677_vm3, %v1296_v48, -inf  ;;  %v1315_v59 = vsel %vm677_vm3, %v1297_v53, -inf }
 0x2ed   : > { %1310 = vmax.xlane.f32.xlu0 %v1309_v51  ;;  %1313 = vmax.xlane.f32.xlu1 %v1312_v52 }
 0x2ee   : > { %v1204_v54 = vpop.f32.mrf.mxu0  ;;  %v1280_v55 = vpop.f32.mrf.mxu1 }
 0x2ef   : > { %v1298_v56 = vsel %vm3443_vm5, %v1204_v54, -1000000.0  ;;  %v1299_v61 = vsel %vm3443_vm5, %v1280_v55, -1000000.0 }
 0x2f0   : > { %v2728_v57 = vpop.f32.mrf.mxu0  ;;  %v2733_v58 = vpop.f32.mrf.mxu1  ;;  %v1318_v60 = vsel %vm677_vm3, %v1298_v56, -inf  ;;  %v1321_v62 = vsel %vm677_vm3, %v1299_v61, -inf }
 0x2f1   : > { %1316 = vmax.xlane.f32.xlu0 %v1315_v59  ;;  %1319 = vmax.xlane.f32.xlu1 %v1318_v60 }
 0x2f5   : > { %1322 = vmax.xlane.f32.xlu0 %v1321_v62 }
 0x302   : > { %1388 = vrot.lane.b32.xlu1 %v3350_v10, %s3069_s15 }
 0x306   : > { %1540 = vrot.lane.b32.xlu1 %v3368_v13, %s3069_s15 }
 0x308   : > { %v1302_v63 = vpop.xlane.xlu0 %1301 }
 0x309   : > { %v1324_v0 = vsub.f32 %v1289_v30, %v1302_v63 }
 0x30a   : > { %1616 = vrot.lane.b32.xlu1 %v3363_v11, %s3069_s15 }
 0x30b   : > { %1464 = vrot.lane.b32.xlu0 %v3365_v12, %s3069_s15  ;;  %v1332_v1 = vmul.f32 1.442695, %v1324_v0 }
 0x30d   : > { %2880 = vpow2.f32 %v1332_v1 }
 0x30e   : > { %1768 = vrot.lane.b32.xlu1 %v3372_v14, %s3069_s15 }
 0x30f   : > { %1692 = vrot.lane.b32.xlu0 %v3348_v9, %s3069_s15 }
 0x31a   : > { %v3474_v2 = vpop.eup %2880 }
 0x31b   : > { %v1348_v3 = vsel %vm677_vm3, %v3474_v2, 0.0 }
 0x332   : > { %1349 = vadd.xlane.f32.xlu1 %v1348_v3 }
 0x36e   : > { %v1305_v5 = vpop.xlane.xlu1 %1304 }
 0x36f   : > { %v1325_v6 = vsub.f32 %v1290_v34, %v1305_v5 }
 0x371   : > { %v1334_v10 = vmul.f32 1.442695, %v1325_v6 }
 0x372   : > { %v1308_v11 = vpop.xlane.xlu0 %1307 }
 0x373   : > { %2882 = vpow2.f32 %v1334_v10  ;;  %v1326_v12 = vsub.f32 %v1291_v40, %v1308_v11 }
 0x375   : > { %v1336_v13 = vmul.f32 1.442695, %v1326_v12 }
 0x376   : > { %v1314_v14 = vpop.xlane.xlu1 %1313  ;;  %v1311_v17 = vpop.xlane.xlu0 %1310 }
 0x377   : > { %2884 = vpow2.f32 %v1336_v13  ;;  %v1328_v9 = vsub.f32 %v1296_v48, %v1314_v14  ;;  %v1327_v18 = vsub.f32 %v1292_v45, %v1311_v17 }
 0x379   : > { %v1340_v19 = vmul.f32 1.442695, %v1328_v9  ;;  %v1338_v20 = vmul.f32 1.442695, %v1327_v18  ;;  %v2031_v9 = vld [vmem:[%s3281_s21 + $0x18] sm:$0xff] }
 0x37a   : > { %v1320_v21 = vpop.xlane.xlu1 %1319  ;;  %v1317_v22 = vpop.xlane.xlu0 %1316 }
 0x37b   : > { %2886 = vpow2.f32 %v1340_v19  ;;  %v1330_v23 = vsub.f32 %v1298_v56, %v1320_v21  ;;  %v1329_v24 = vsub.f32 %v1297_v53, %v1317_v22  ;;  %v2030_v19 = vld [vmem:[%s3281_s21 + $0x10] sm:$0xff]  ;;  %v2028_v22 = vld [vmem:[%s3281_s21] sm:$0xff] }
 0x37c   : > { %2888 = vpow2.f32 %v1338_v20  ;;  %v2029_v20 = vld [vmem:[%s3281_s21 + $0x8] sm:$0xff] }
 0x37d   : > { %v1344_v25 = vmul.f32 1.442695, %v1330_v23  ;;  %v1342_v26 = vmul.f32 1.442695, %v1329_v24 }
 0x37e   : > { %v1389_v27 = vpop.permute.xlu1 %1388  ;;  %v1323_v28 = vpop.xlane.xlu0 %1322 }
 0x37f   : > { %2890 = vpow2.f32 %v1344_v25  ;;  %v1331_v29 = vsub.f32 %v1299_v61, %v1323_v28  ;;  %2735 = vmatpush3.msra.mxu0 %v1389_v27 }
 0x380   : > { %v2883_v30 = vpop.eup %2882  ;;  %2892 = vpow2.f32 %v1342_v26  ;;  %2744 = vmatprep.subr.mxu0 %v3063_v8 }
 0x381   : > { %v1346_v31 = vmul.f32 1.442695, %v1331_v29  ;;  %v1351_v32 = vsel %vm677_vm3, %v2883_v30, 0.0 }
 0x382   : > { %1352 = vadd.xlane.f32.xlu0 %v1351_v32  ;;  %v1465_v33 = vpop.permute.xlu0 %1464  ;;  %v1541_v46 = vpop.permute.xlu1 %1540 }
 0x383   : > { %2894 = vpow2.f32 %v1346_v31  ;;  %2740 = vmatpush3.msra.mxu1 %v1465_v33 }
 0x384   : > { %v2885_v34 = vpop.eup %2884  ;;  %2749 = vmatprep.subr.mxu1 %v3063_v8 }
 0x385   : > { %v1354_v35 = vsel %vm677_vm3, %v2885_v34, 0.0 }
 0x386   : > { %1355 = vadd.xlane.f32.xlu1 %v1354_v35  ;;  %v1617_v47 = vpop.permute.xlu1 %1616 }
 0x388   : > { %v2887_v36 = vpop.eup %2886 }
 0x389   : > { %v2889_v37 = vpop.eup %2888  ;;  %v1360_v38 = vsel %vm677_vm3, %v2887_v36, 0.0 }
 0x38a   : > { %1361 = vadd.xlane.f32.xlu1 %v1360_v38  ;;  %v1357_v39 = vsel %vm677_vm3, %v2889_v37, 0.0  ;;  %v1769_v48 = vpop.permute.xlu1 %1768 }
 0x38b   : > { %1358 = vadd.xlane.f32.xlu0 %v1357_v39 }
 0x38c   : > { %v2891_v40 = vpop.eup %2890 }
 0x38d   : > { %v3484_v41 = vpop.eup %2892  ;;  %v1366_v42 = vsel %vm677_vm3, %v2891_v40, 0.0 }
 0x38e   : > { %1367 = vadd.xlane.f32.xlu1 %v1366_v42  ;;  %v1363_v43 = vsel %vm677_vm3, %v3484_v41, 0.0 }
 0x38f   : > { %1364 = vadd.xlane.f32.xlu0 %v1363_v43 }
 0x390   : > { %v3489_v44 = vpop.eup %2894 }
 0x391   : > { %v1369_v45 = vsel %vm677_vm3, %v3489_v44, 0.0 }
 0x393   : > { %1370 = vadd.xlane.f32.xlu0 %v1369_v45 }
 0x39f   : > { %1920 = vrot.lane.b32.xlu1 %v3378_v16, %s3069_s15  ;;  %v1693_v16 = vpop.permute.xlu0 %1692 }
 0x3a9   : > { %1844 = vrot.lane.b32.xlu0 %v3374_v15, %s3069_s15 }
 0x3bb   : > { %v1350_v49 = vpop.xlane.xlu1 %1349 }
 0x3bc   : > { %2896 = vrcp.f32 %v1350_v49 }
 0x3c9   : > { %v2897_v50 = vpop.eup %2896 }
 0x3ca   : > { %v1380_v51 = vmul.f32 %v2897_v50, %v3474_v2 }
 0x3cc   : > { %2737 = vmatmul.mubr.msk.f32.vlgmr.msra.gmra.mxu0 %vm677_vm3, %v1380_v51 }
 0x3cd   : > { %2745 = vmatpush3.msra.mxu0 %v1541_v46  ;;  %2746 = vmatprep.mubr.msk.f32.mxu0 %vm3066_vm2, %v3063_v8 }
 0x3ce   : > { %2754 = vmatprep.subr.mxu0 %v3063_v8 }
 0x40b   : > { %v1353_v52 = vpop.xlane.xlu0 %1352 }
 0x40c   : > { %2898 = vrcp.f32 %v1353_v52 }
 0x40f   : > { %v1356_v15 = vpop.xlane.xlu1 %1355 }
 0x410   : > { %2900 = vrcp.f32 %v1356_v15 }
 0x413   : > { %v1362_v53 = vpop.xlane.xlu1 %1361 }
 0x414   : > { %2902 = vrcp.f32 %v1362_v53  ;;  %v1359_v54 = vpop.xlane.xlu0 %1358 }
 0x415   : > { %2904 = vrcp.f32 %v1359_v54 }
 0x417   : > { %v1368_v55 = vpop.xlane.xlu1 %1367 }
 0x418   : > { %2906 = vrcp.f32 %v1368_v55  ;;  %v1365_v56 = vpop.xlane.xlu0 %1364 }
 0x419   : > { %v2899_v57 = vpop.eup %2898  ;;  %2908 = vrcp.f32 %v1365_v56 }
 0x41a   : > { %v1381_v58 = vmul.f32 %v2899_v57, %v2883_v30 }
 0x41b   : > { %v1921_v11 = vpop.permute.xlu1 %1920 }
 0x41c   : > { %v1371_v59 = vpop.xlane.xlu0 %1370  ;;  %2742 = vmatmul.mubr.msk.f32.vlgmr.msra.gmra.mxu1 %vm677_vm3, %v1381_v58  ;;  %v2163_v58 = vld [vmem:[%s3287_s23 + $0x18] sm:$0xff] }
 0x41d   : > { %v2901_v60 = vpop.eup %2900  ;;  %2910 = vrcp.f32 %v1371_v59  ;;  %2750 = vmatpush3.msra.mxu1 %v1617_v47  ;;  %2751 = vmatprep.mubr.msk.f32.mxu1 %vm3066_vm2, %v3063_v8  ;;  %v2162_v59 = vld [vmem:[%s3287_s23 + $0x10] sm:$0xff] }
 0x41e   : > { %v1382_v61 = vmul.f32 %v2901_v60, %v2885_v34  ;;  %2759 = vmatprep.subr.mxu1 %v3063_v8  ;;  %v2161_v60 = vld [vmem:[%s3287_s23 + $0x8] sm:$0xff] }
 0x420   : > { %2747 = vmatmul.mubr.msk.f32.vlgmr.msra.gmra.mxu0 %vm677_vm3, %v1382_v61  ;;  %v1845_v2 = vpop.permute.xlu0 %1844  ;;  %v2160_v61 = vld [vmem:[%s3287_s23] sm:$0xff] }
 0x421   : > { %v2903_v62 = vpop.eup %2902  ;;  %2755 = vmatpush3.msra.mxu0 %v1693_v16  ;;  %2756 = vmatprep.mubr.msk.f32.mxu0 %vm3066_vm2, %v3063_v8 }
 0x422   : > { %v2905_v63 = vpop.eup %2904  ;;  %2764 = vmatprep.subr.mxu0 %v3063_v8  ;;  %v1384_v0 = vmul.f32 %v2903_v62, %v2887_v36  ;;  %v2261_v62 = vld [vmem:[%s3317_s30 + $0x38] sm:$0xff] }
 0x423   : > { %v1383_v1 = vmul.f32 %v2905_v63, %v2889_v37  ;;  %v2260_v63 = vld [vmem:[%s3317_s30 + $0x30] sm:$0xff] }
 0x424   : > { %2757 = vmatmul.mubr.msk.f32.vlgmr.msra.gmra.mxu0 %vm677_vm3, %v1384_v0  ;;  %v2259_v0 = vld [vmem:[%s3317_s30 + $0x28] sm:$0xff] }
 0x425   : > { %v2907_v3 = vpop.eup %2906  ;;  %2752 = vmatmul.mubr.msk.f32.vlgmr.msra.gmra.mxu1 %vm677_vm3, %v1383_v1  ;;  %2765 = vmatpush3.msra.mxu0 %v1845_v2  ;;  %v2258_v1 = vld [vmem:[%s3317_s30 + $0x20] sm:$0xff] }
 0x426   : > { %v2909_v5 = vpop.eup %2908  ;;  %2760 = vmatpush3.msra.mxu1 %v1769_v48  ;;  %2761 = vmatprep.mubr.msk.f32.mxu1 %vm3066_vm2, %v3063_v8  ;;  %v1386_v6 = vmul.f32 %v2907_v3, %v2891_v40 }
 0x427   : > { %2766 = vmatprep.mubr.msk.f32.mxu0 %vm3066_vm2, %v3063_v8  ;;  %2769 = vmatprep.subr.mxu1 %v3063_v8  ;;  %v1385_v10 = vmul.f32 %v2909_v5, %v3484_v41 }
 0x428   : > { %2767 = vmatmul.mubr.msk.f32.vlgmr.msra.gmra.mxu0 %vm677_vm3, %v1386_v6  ;;  %2774 = vmatprep.subr.mxu0 %v2031_v9 }
 0x429   : > { %2762 = vmatmul.mubr.msk.f32.vlgmr.msra.gmra.mxu1 %vm677_vm3, %v1385_v10  ;;  %2775 = vmatpush3.msra.mxu0 %v2031_v9 }
 0x42a   : > { %v2911_v12 = vpop.eup %2910  ;;  %2770 = vmatpush3.msra.mxu1 %v1921_v11  ;;  %2771 = vmatprep.mubr.msk.f32.mxu1 %vm3066_vm2, %v3063_v8 }
 0x42b   : > { %v1387_v13 = vmul.f32 %v2911_v12, %v3489_v44  ;;  %2776 = vmatprep.subr.mxu0 %v2030_v19  ;;  %2785 = vmatprep.subr.mxu1 %v2163_v58 }
 0x42c   : > { %2777 = vmatpush3.msra.mxu0 %v2030_v19 }
 0x42d   : > { %2772 = vmatmul.mubr.msk.f32.vlgmr.msra.gmra.mxu1 %vm677_vm3, %v1387_v13  ;;  %2778 = vmatprep.subr.mxu0 %v2029_v20  ;;  %v2605_v13 = vld [vmem:[%s3656_s6] ss:$0 sm:$0xff] }
 0x42e   : > { %2779 = vmatpush3.msra.mxu0 %v2029_v20  ;;  %2786 = vmatpush3.msra.mxu1 %v2163_v58  ;;  %v2614_v58 = vld [vmem:[%s563_s28] ss:$0 sm:$0xff] }
 0x42f   : > { %2780 = vmatprep.subr.mxu0 %v2028_v22  ;;  %2787 = vmatprep.subr.mxu1 %v2162_v59 }
 0x430   : > { %2781 = vmatpush3.msra.mxu0 %v2028_v22  ;;  %2788 = vmatpush3.msra.mxu1 %v2162_v59  ;;  %v2257_v22 = vld [vmem:[%s3317_s30 + $0x18] sm:$0xff] }
 0x431   : > { %2789 = vmatprep.subr.mxu1 %v2161_v60  ;;  %2796 = vmatprep.subr.mxu0 %v2261_v62 }
 0x432   : > { %2790 = vmatpush3.msra.mxu1 %v2161_v60 }
 0x433   : > { %2791 = vmatprep.subr.mxu1 %v2160_v61 }
 0x434   : > { %2792 = vmatpush3.msra.mxu1 %v2160_v61 }
 0x48c   : > { %v1460_v14 = vpop.f32.mrf.mxu0 }
 0x48e   : > { %v2738_v17 = vpop.f32.mrf.mxu0 }
 0x48f   : > { %v2606_v17 = vld [vmem:[%s3657_s3] ss:$0 sm:$0xff] }
 0x4dc   : > { %v1536_v18 = vpop.f32.mrf.mxu1 }
 0x4dd   : > { %1997 = vrot.lane.b32.xlu0 %v1536_v18, %s3070_s17 }
 0x4de   : > { %v2743_v21 = vpop.f32.mrf.mxu1 }
 0x4e0   : > { %v1612_v8 = vpop.f32.mrf.mxu0 }
 0x4e1   : > { %2001 = vrot.lane.b32.xlu1 %v1612_v8, %s3071_s24 }
 0x4e2   : > { %v2748_v23 = vpop.f32.mrf.mxu0 }
 0x4e3   : > { %v2256_v23 = vld [vmem:[%s3317_s30 + $0x10] sm:$0xff] }
 0x4e4   : > { %v1764_v24 = vpop.f32.mrf.mxu0 }
 0x4e5   : > { %v1688_v25 = vpop.f32.mrf.mxu1 }
 0x4e6   : > { %2005 = vrot.lane.b32.xlu1 %v1688_v25, %s3072_s19  ;;  %v2758_v26 = vpop.f32.mrf.mxu0  ;;  %v2254_v25 = vld [vmem:[%s3317_s30] sm:$0xff] }
 0x4e7   : > { %v2753_v27 = vpop.f32.mrf.mxu1  ;;  %v2607_v26 = vld [vmem:[%s549_s26] ss:$0 sm:$0xff] }
 0x4e8   : > { %v1916_v28 = vpop.f32.mrf.mxu0 }
 0x4e9   : > { %v1840_v29 = vpop.f32.mrf.mxu1 }
 0x4ea   : > { %2014 = vrot.lane.b32.xlu0 %v1840_v29, %s3070_s17  ;;  %v2768_v30 = vpop.f32.mrf.mxu0 }
 0x4eb   : > { %v2763_v31 = vpop.f32.mrf.mxu1 }
 0x4ed   : > { %v1992_v32 = vpop.f32.mrf.mxu1 }
 0x4ee   : > { %2022 = vrot.lane.b32.xlu1 %v1992_v32, %s3072_s19  ;;  %2018 = vrot.lane.b32.xlu0 %v1916_v28, %s3071_s24  ;;  %s3073_s24 = smov [#allocation9]  }
 0x4ef   : > { %v2773_v33 = vpop.f32.mrf.mxu1  ;;  %s2405_s19 = sshll.u32 %s3073_s24, 4  ;;  %s2406_s19 = int_to_ptr.vmem [resolvable:$true] %s2405_s19 }
 0x4f0   : > { %v2610_v33 = vld [vmem:[%s557_s20] ss:$0 sm:$0xff]  ;;  %p2995_p3 = scmp.lt.s32.totalorder %s2406_s19, %s2406_s19 }
 0x54f   : > { %v1998_v35 = vpop.permute.xlu0 %1997 }
 0x550   : > { %v2008_v36 = vsel %vm677_vm3, %v1460_v14, %v1998_v35 }
 0x553   : > { %v2002_v34 = vpop.permute.xlu1 %2001 }
 0x554   : > { %v2010_v37 = vsel %vm2009_vm6, %v2008_v36, %v2002_v34 }
 0x558   : > { %v2006_v38 = vpop.permute.xlu1 %2005 }
 0x559   : > { %v2012_v39 = vsel %vm2011_vm7, %v2010_v37, %v2006_v38 }
 0x55a   : > { %2782 = vmatprep.mubr.msk.f32.mxu0 %vm579_vm1, %v2012_v39 }
 0x55c   : > { %v2015_v40 = vpop.permute.xlu0 %2014 }
 0x55d   : > { %v2025_v41 = vsel %vm677_vm3, %v1764_v24, %v2015_v40  ;;  %v2255_v24 = vld [vmem:[%s3317_s30 + $0x8] sm:$0xff] }
 0x560   : > { %v2023_v42 = vpop.permute.xlu1 %2022  ;;  %v2019_v43 = vpop.permute.xlu0 %2018 }
 0x561   : > { %v2026_v44 = vsel %vm2009_vm6, %v2025_v41, %v2019_v43 }
 0x562   : > { %v2027_v45 = vsel %vm2011_vm7, %v2026_v44, %v2023_v42 }
 0x563   : > { %2783 = vmatmul.mubr.msk.f32.vlgmr.msra.gmra.mxu0 %vm579_vm1, %v2027_v45 }
 0x564   : > { %2797 = vmatpush3.msra.mxu0 %v2261_v62 }
 0x565   : > { %2798 = vmatprep.subr.mxu0 %v2260_v63 }
 0x566   : > { %2799 = vmatpush3.msra.mxu0 %v2260_v63 }
 0x567   : > { %2800 = vmatprep.subr.mxu0 %v2259_v0 }
 0x568   : > { %2801 = vmatpush3.msra.mxu0 %v2259_v0 }
 0x569   : > { %2802 = vmatprep.subr.mxu0 %v2258_v1 }
 0x56a   : > { %2803 = vmatpush3.msra.mxu0 %v2258_v1 }
 0x56b   : > { %2804 = vmatprep.subr.mxu0 %v2257_v22 }
 0x56c   : > { %2805 = vmatpush3.msra.mxu0 %v2257_v22 }
 0x56d   : > { %2806 = vmatprep.subr.mxu0 %v2256_v23 }
 0x56e   : > { %2807 = vmatpush3.msra.mxu0 %v2256_v23 }
 0x56f   : > { %2808 = vmatprep.subr.mxu0 %v2255_v24 }
 0x570   : > { %2809 = vmatpush3.msra.mxu0 %v2255_v24 }
 0x571   : > { %2810 = vmatprep.subr.mxu0 %v2254_v25 }
 0x572   : > { %2811 = vmatpush3.msra.mxu0 %v2254_v25 }
 0x623   : > { %v2784_v46 = vpop.f32.mrf.mxu0 }
 0x624   : > { %v2114_v47 = vadd.f32 %v2784_v46, %v3342_v7 }
 0x625   : > { %v2104_v48 = vpop.f32.mrf.mxu0 }
 0x626   : > { %v2113_v49 = vadd.f32 %v2104_v48, %v3338_v4  ;;  %v2118_v50 = vsel %vm579_vm1, %v2114_v47, 0.0 }
 0x627   : > { %2119 = vadd.xlane.f32.xlu1 %v2118_v50 }
 0x628   : > { %v2115_v51 = vsel %vm579_vm1, %v2113_v49, 0.0 }
 0x629   : > { %2116 = vadd.xlane.f32.xlu0 %v2115_v51 }
 0x6b0   : > { %v2120_v16 = vpop.xlane.xlu1 %2119 }
 0x6b1   : > { %v2123_v52 = vmul.f32 0.03125, %v2120_v16 }
 0x6b2   : > { %v2117_v15 = vpop.xlane.xlu0 %2116 }
 0x6b3   : > { %v2122_v53 = vmul.f32 0.03125, %v2117_v15  ;;  %v2125_v54 = vsub.f32 %v2114_v47, %v2123_v52 }
 0x6b5   : > { %v2124_v55 = vsub.f32 %v2113_v49, %v2122_v53  ;;  %v2127_v4 = vmul.f32 %v2125_v54, %v2125_v54 }
 0x6b7   : > { %v2126_v7 = vmul.f32 %v2124_v55, %v2124_v55  ;;  %v2131_v57 = vsel %vm579_vm1, %v2127_v4, 0.0 }
 0x6b9   : > { %v2128_v56 = vsel %vm579_vm1, %v2126_v7, 0.0 }
 0x6ba   : > { %2129 = vadd.xlane.f32.xlu0 %v2128_v56  ;;  %v2613_v56 = vld [vmem:[%s560_s22] ss:$0 sm:$0xff]  ;;  %s2988_s22 = scalar_lea.vmem %s2406_s19, 256 }
 0x6bb   : > { %p2989_p9 = scmp.ne.s32.totalorder %s2406_s19, %s2988_s22  ;;  %p2996_p5 = scmp.lt.s32.totalorder %s2988_s22, %s2988_s22 }
 0x6bd   : > { %p2990_p11 = pnand %p2989_p9, %p2831_p6  ;;  %p2997_p0 = por %p2996_p5, %p2995_p3 }
 0x6be   : > { %2132 = vadd.xlane.f32.xlu0 %v2131_v57 }
 0x6bf   : > { %p2991_p1 = pneg %p2990_p11 }
 0x6c1   : > { %p2998_p4 = pnand %p2997_p0, %p2991_p1 }
 0x743   : > { %v2130_v2 = vpop.xlane.xlu0 %2129 }
 0x744   : > { %v2134_v3 = vmul.f32 0.03125, %v2130_v2 }
 0x746   : > { %v2136_v5 = vadd.f32 1e-05, %v2134_v3 }
 0x747   : > { %v2133_v6 = vpop.xlane.xlu0 %2132 }
 0x748   : > { %2912 = vrsqrt.f32 %v2136_v5  ;;  %v2135_v10 = vmul.f32 0.03125, %v2133_v6 }
 0x74a   : > { %v2137_v11 = vadd.f32 1e-05, %v2135_v10 }
 0x74c   : > { %2914 = vrsqrt.f32 %v2137_v11 }
 0x755   : > { %v2913_v12 = vpop.eup %2912 }
 0x756   : > { %v2140_v14 = vmul.f32 %v2913_v12, %v2124_v55 }
 0x758   : > { %v2149_v9 = vmul.f32 %v2605_v13, %v2140_v14 }
 0x759   : > { %v2915_v18 = vpop.eup %2914 }
 0x75a   : > { %v2141_v19 = vmul.f32 %v2915_v18, %v2125_v54  ;;  %v2158_v20 = vadd.f32 %v2606_v17, %v2149_v9 }
 0x75c   : > { %v2150_v21 = vmul.f32 %v2605_v13, %v2141_v19  ;;  %2793 = vmatprep.mubr.msk.f32.mxu1 %vm579_vm1, %v2158_v20 }
 0x75e   : > { %v2159_v8 = vadd.f32 %v2606_v17, %v2150_v21 }
 0x760   : > { %2794 = vmatmul.mubr.msk.f32.vlgmr.msra.gmra.mxu1 %vm579_vm1, %v2159_v8 }
 0x820   : > { %v2795_v27 = vpop.f32.mrf.mxu1 }
 0x821   : > { %v2249_v28 = vadd.f32 %v2795_v27, %v2607_v26 }
 0x822   : > { %v2243_v29 = vpop.f32.mrf.mxu1 }
 0x823   : > { %v2244_v30 = vadd.f32 %v2607_v26, %v2243_v29  ;;  %v2253_v32 = vmax.f32 %v2249_v28, 0.0 }
 0x825   : > { %v2252_v31 = vmax.f32 %v2244_v30, 0.0 }
 0x827   : > { %2812 = vmatprep.mubr.msk.f32.mxu0 %vm2269_vm8, %v2252_v31 }
 0x828   : > { %2813 = vmatmul.mubr.msk.f32.vlgmr.msra.gmra.mxu0 %vm2269_vm8, %v2253_v32 }
 0x8e8   : > { %v2814_v34 = vpop.f32.mrf.mxu0 }
 0x8e9   : > { %v2348_v35 = vadd.f32 %v2814_v34, %v2610_v33 }
 0x8ea   : > { %v2342_v36 = vpop.f32.mrf.mxu0 }
 0x8eb   : > { %v2343_v37 = vadd.f32 %v2610_v33, %v2342_v36  ;;  %v2352_v38 = vadd.f32 %v2348_v35, %v2159_v8 }
 0x8ed   : > { %v2356_v39 = vsel %vm579_vm1, %v2352_v38, 0.0  ;;  %v2351_v40 = vadd.f32 %v2343_v37, %v2158_v20 }
 0x8ee   : > { %2357 = vadd.xlane.f32.xlu0 %v2356_v39 }
 0x8ef   : > { %v2353_v41 = vsel %vm579_vm1, %v2351_v40, 0.0 }
 0x8f0   : > { %2354 = vadd.xlane.f32.xlu1 %v2353_v41 }
 0x977   : > { %v2358_v42 = vpop.xlane.xlu0 %2357 }
 0x978   : > { %v2360_v43 = vmul.f32 0.03125, %v2358_v42 }
 0x979   : > { %v2355_v44 = vpop.xlane.xlu1 %2354 }
 0x97a   : > { %v2362_v45 = vsub.f32 %v2352_v38, %v2360_v43  ;;  %v2359_v46 = vmul.f32 0.03125, %v2355_v44 }
 0x97c   : > { %v2361_v47 = vsub.f32 %v2351_v40, %v2359_v46  ;;  %v2364_v48 = vmul.f32 %v2362_v45, %v2362_v45 }
 0x97e   : > { %v2368_v49 = vsel %vm579_vm1, %v2364_v48, 0.0  ;;  %v2363_v50 = vmul.f32 %v2361_v47, %v2361_v47 }
 0x97f   : > { %2369 = vadd.xlane.f32.xlu0 %v2368_v49 }
 0x980   : > { %v2365_v51 = vsel %vm579_vm1, %v2363_v50, 0.0 }
 0x981   : > { %2366 = vadd.xlane.f32.xlu1 %v2365_v51 }
 0xa08   : > { %v2370_v16 = vpop.xlane.xlu0 %2369 }
 0xa09   : > { %v2372_v52 = vmul.f32 0.03125, %v2370_v16 }
 0xa0a   : > { %v2367_v15 = vpop.xlane.xlu1 %2366 }
 0xa0b   : > { %v2374_v53 = vadd.f32 1e-05, %v2372_v52  ;;  %v2371_v54 = vmul.f32 0.03125, %v2367_v15 }
 0xa0d   : > { %2916 = vrsqrt.f32 %v2374_v53  ;;  %v2373_v55 = vadd.f32 1e-05, %v2371_v54 }
 0xa0f   : > { %2918 = vrsqrt.f32 %v2373_v55 }
 0xa1a   : > { %v2917_v7 = vpop.eup %2916 }
 0xa1b   : > { %v2378_v4 = vmul.f32 %v2917_v7, %v2362_v45 }
 0xa1c   : > { %v2919_v57 = vpop.eup %2918 }
 0xa1d   : > { %v2377_v59 = vmul.f32 %v2919_v57, %v2361_v47  ;;  %v2387_v60 = vmul.f32 %v2613_v56, %v2378_v4 }
 0xa1f   : > { %v2386_v61 = vmul.f32 %v2613_v56, %v2377_v59  ;;  %v2396_v62 = vadd.f32 %v2614_v58, %v2387_v60 }
 0xa21   : > { %v2395_v63 = vadd.f32 %v2614_v58, %v2386_v61  ;;  %2398 = vst.msk [vmem:[#allocation9 + $0x8] sm:$0xff] %vm579_vm1, %v2396_v62 }
 0xa23   : > { %2397 = vst.msk [vmem:[#allocation9] sm:$0xff] %vm579_vm1, %v2395_v63 }
 0xa24   : > { %3001 = shalt.err (!%p2998_p4)
}
 0xa25   : > { %s3074_s27 = smov 128  }
 0xa26   : > { %2820 = dma.vmem_to_hbm [thread:$0]  (%p2831_p6), %s2406_s19, 256, %s3628_s12, [#allocation6], %s3074_s27, %s3074_s27, %s3070_s17  }
 0xa27   : > { %3039 = dma.done.wait (%p2831_p6), [#allocation6], 256  }
 0xa28   : > { %3041 = vsyncadd (%p2831_p6), [#allocation6], 4294967040 }
 0xa29 PF: > { %s3658_s28 = sld [smem:[#allocation16_spill]] }
 0xa2a   : > { %s3659_s26 = sld [smem:[#allocation14_spill]] }
 0xa2b   : > { %s3660_s0 = sld [smem:[#allocation15_spill]] }
 0xa2c   : > { %s3661_s27 = sld [smem:[#allocation17_spill]] }
 0xa2f   : > { %p32_p7 = scmp.ge.s32.totalorder %s3658_s28, 4  }
 0xa31   :  { %34 = sbr.rel (!%p32_p7) target bundleno = 22 (0x16), region = 142 }
 0xa36   :  { %2421 = vsyncpa [#allocation5], 1 }
 0xa37   :  { %2423 = vsyncpa [#allocation5 + $0x1], 1 }
 0xa38   :  { %2424 = vsyncpa [#allocation8], 1 }
 0xa39   :  { %2426 = vsyncpa [#allocation8 + $0x1], 1 }
 0xa3a   :  { %2427 = vsyncpa [#allocation6], 1 }
 0xa3b   :  { %2429 = vsyncpa [#allocation6 + $0x1], 1 }

</bundles_post_ra>
